<compile_context>
chip_gen: v6e
topology: v6e:2x2x1
jax: 0.10.0
libtpu: 0.0.40
codegen_flags: <defaults>
</compile_context>

<pallas_src>
import math

import jax
import jax.numpy as jnp
from jax.experimental import pallas as pl
from jax.experimental.pallas import tpu as pltpu


# ----------------------------------------------------------------------------
# The single fused kernel:
#   vision backbone (im2col conv + ReLU + GAP + fc)  ->  item/user projections ->
#   node gather -> GAT layer -> (VMEM scratch) -> token gather -> CLS-query attention ->
#   post-LN encoder layer (CLS rows only) -> lane-dense (batch, 4*H) output.
# ----------------------------------------------------------------------------
def _gat_tf_kernel(
        # vision backbone (transposed / lane-dense layout)
        patches_t_ref, conv_wt_ref, conv_bc_ref, pool_ref, fc_w_ref, fc_b_ref,
        # item / user projections
        itext_ref, wi_img_ref, wi_txt_ref, item_b_ref,
        user_ref, user_w_ref, user_b_ref,
        # node assembly + GAT layer
        p_item_ref, p_user_ref, adj_ref, gat_w_ref, gat_b_ref,
        # transformer (CLS-only) inputs
        fh_ref, gmat_ref, kq_ref, segmask_ref,
        wv_ref, bv_ref, wo_ref, bo_ref,
        ln1g_ref, ln1b_ref, w1_ref, b1_ref, w2_ref, b2_ref, ln2g_ref, ln2b_ref,
        # lane-dense output packing selectors
        rep4_ref, bm_ref, sel2_ref,
        # output
        o_ref,
        # scratch
        node_aug_ref):
    f32 = jnp.float32
    dot = lambda a, b: jnp.dot(a, b, preferred_element_type=f32)

    # --- vision backbone, transposed so the big activation is lane-dense: (Cc, N*Ho*Wo) ---
    h_t = jnp.maximum(dot(conv_wt_ref[...], patches_t_ref[...]) + conv_bc_ref[...], 0.0)
    # global-average-pool: contract the position axis of both operands (A @ B^T pattern),
    # so h_t never has to be transposed back.
    gap = jax.lax.dot_general(pool_ref[...], h_t, (((1,), (1,)), ((), ())),
                              preferred_element_type=f32)                   # (N, Cc)
    img = dot(gap, fc_w_ref[...]) + fc_b_ref[...]                           # (N, img_hidden)

    # --- item_proj on concat([image_emb, item_text]) without a concat: split weight ---
    item = (dot(img, wi_img_ref[...]) + dot(itext_ref[...], wi_txt_ref[...])
            + item_b_ref[...])                                              # (N, H)
    user = dot(user_ref[...], user_w_ref[...]) + user_b_ref[...]            # (U, H)

    # --- node_emb[input_emb_index] via one-hot matmuls (attr rows select nothing -> zeros) ---
    node = dot(p_item_ref[...], item) + dot(p_user_ref[...], user)          # (n_nodes, H)

    # --- GAT stand-in: relu(A_norm @ (X W + b)) ---
    g = dot(node, gat_w_ref[...]) + gat_b_ref[...]
    gat_out = jnp.maximum(dot(adj_ref[...], g), 0.0)                        # (n_nodes, H)

    # --- augmented node table kept in VMEM: GAT nodes + f_h as a virtual CLS node (last row) ---
    n_gat = gat_out.shape[0]
    node_aug_ref[pl.ds(0, n_gat), :] = gat_out
    node_aug_ref[pl.ds(n_gat, 1), :] = fh_ref[...]
    node_aug = node_aug_ref[...]                                            # (n_nodes+1, H)

    # --- token assembly + CLS-query attention, per-sequence softmax in (B4, B4*L) layout ---
    tok = dot(gmat_ref[...], node_aug)                                      # (B4*L, H)
    # score_j = tok_j . kq ; computed as a (1, B4*L) lane-dense row (A @ B^T pattern)
    s_row = jax.lax.dot_general(kq_ref[...], tok, (((1,), (1,)), ((), ())),
                                preferred_element_type=f32)                 # (1, B4*L)
    s = s_row + segmask_ref[...]                                            # (B4, B4*L)
    s = s - jnp.max(s, axis=-1, keepdims=True)      # per-SEQUENCE max (correctness fix)
    e = jnp.exp(s)                                  # out-of-segment / padded rows -> exactly 0
    denom = jnp.sum(e, axis=-1, keepdims=True)      # (B4, 1) via lane reduce (no seg matmul)
    v = dot(tok, wv_ref[...]) + bv_ref[...]                                 # (B4*L, H)
    ctx = dot(e, v) / denom                         # exact divide (correctness fix)
    attn = dot(ctx, wo_ref[...]) + bo_ref[...]                              # (B4, H)

    # --- post-LN encoder layer, CLS rows only (x[:, 0, :] == f_h for every sequence) ---
    h = fh_ref[...] + attn
    mu = jnp.mean(h, axis=-1, keepdims=True)
    var = jnp.mean(jnp.square(h - mu), axis=-1, keepdims=True)
    h = (h - mu) * jax.lax.rsqrt(var + 1e-5) * ln1g_ref[...] + ln1b_ref[...]
    f = dot(h, w1_ref[...]) + b1_ref[...]
    # TODO(synk): tanh-approx GELU inside the synthesized transformer FFN (kernel-friendly).
    f = jax.nn.gelu(f, approximate=True)
    f = dot(f, w2_ref[...]) + b2_ref[...]
    h2 = h + f
    mu2 = jnp.mean(h2, axis=-1, keepdims=True)
    var2 = jnp.mean(jnp.square(h2 - mu2), axis=-1, keepdims=True)
    y = (h2 - mu2) * jax.lax.rsqrt(var2 + 1e-5) * ln2g_ref[...] + ln2b_ref[...]   # (B4, H)

    # --- lane-dense (batch, 4*H) output via selection matmuls (no in-kernel relayout) ---
    # o[b, t*H + d] = y[b*4 + t, d]
    y_rep = dot(y, rep4_ref[...])                                           # (B4, 4*H)
    o_ref[...] = dot(sel2_ref[...], y_rep * bm_ref[...]).astype(o_ref.dtype)  # (batch, 4*H)


# ----------------------------------------------------------------------------
# JAX-boundary wrapper: layout plumbing only; all dense math is in the kernel.
# ----------------------------------------------------------------------------
def _fused_forward_cls(params, graph_adj, input_emb_index, src_index, subgraph_mask,
                       item_image, item_text, attr_text, user_emb_index):
    f32 = jnp.float32
    rp = params["resnet"]
    tp = params["transformer"]

    n_img = item_image.shape[0]
    n_attr = attr_text.shape[0]
    n_user = user_emb_index.shape[0]
    n_nodes = graph_adj.shape[0]
    img_hidden = rp["fc_w"].shape[1]
    hidden = params["gat_w"].shape[0]
    batch, tuple_len, max_sg = src_index.shape
    b4 = batch * tuple_len
    seq = max_sg + 1

    # TODO(synk): `initialize_vision_backbone(resnet18)` replaced by conv3x3(s=2)+ReLU+GAP+fc.
    patches = jax.lax.conv_general_dilated_patches(
        item_image, filter_shape=(3, 3), window_strides=(2, 2),
        padding=((1, 1), (1, 1)))                                 # (N, C*9, Ho, Wo)
    _, kf, ho, wo = patches.shape
    # transposed (K, N*Ho*Wo) so the in-kernel conv activation is lane-dense
    patches_t = jnp.transpose(patches, (1, 0, 2, 3)).reshape(kf, n_img * ho * wo)
    # global-average-pool as an (N, N*Ho*Wo) block-averaging matrix (contracted against h^T)
    pool = jnp.repeat(jnp.eye(n_img, dtype=f32), ho * wo, axis=1) / float(ho * wo)

    # item_proj weight split for the [image | text] concat (avoids an in-kernel concat)
    wi_img = params["item_proj_w"][:img_hidden]
    wi_txt = params["item_proj_w"][img_hidden:]

    # TODO(synk): pretrained user embedding (torch.load) replaced by a random table.
    user_raw = jnp.take(params["user_embedding"], user_emb_index, axis=0)

    # node_emb = [item_emb ; zeros(attr) ; user_emb]; node_feat = node_emb[input_emb_index]
    idx = input_emb_index
    p_item = (idx[:, None] == jnp.arange(n_img)[None, :]).astype(f32)
    p_user = (idx[:, None] == (n_img + n_attr + jnp.arange(n_user))[None, :]).astype(f32)

    # ---- transformer-CLS plumbing ------------------------------------------------------
    # CLS query is the same for every sequence -> fold Q and K projections into one vector.
    f_h = params["f_h"]
    scale = 1.0 / math.sqrt(hidden)
    q = (jnp.dot(f_h, tp["wq"]) + tp["bq"]) * scale               # (1, H), constant
    kq_row = jnp.dot(q, tp["wk"].T)                               # (1, H): score_j = tok_j . kq
    s_bias = jnp.dot(q, tp["bk"].T)                               # (1, 1): constant (cancels)

    # token gather over the AUGMENTED node table (index n_nodes == virtual f_h / CLS row)
    src_flat = src_index.reshape(b4, max_sg).astype(jnp.int32)
    node_ids = jnp.concatenate(
        [jnp.full((b4, 1), n_nodes, jnp.int32), src_flat], axis=1)          # (B4, L)
    gmat = jax.nn.one_hot(node_ids.reshape(b4 * seq), n_nodes + 1, dtype=f32)   # (B4*L, n_nodes+1)

    # additive per-sequence mask over all B4*L tokens (segment membership + key padding)
    valid = jnp.concatenate(
        [jnp.ones((b4, 1), f32), subgraph_mask.reshape(b4, max_sg).astype(f32)], axis=1)
    tok_seq = jnp.repeat(jnp.arange(b4), seq)                     # sequence id of every token
    same = (jnp.arange(b4)[:, None] == tok_seq[None, :]).astype(f32)        # (B4, B4*L)
    segmask = (same * valid.reshape(1, b4 * seq) - 1.0) * 1e9 + s_bias      # (B4, B4*L)

    # lane-dense output packing selectors: o[b, t*H + d] = y[b*4 + t, d]
    rep4 = jnp.tile(jnp.eye(hidden, dtype=f32), (1, tuple_len))             # (H, 4H)
    bm = ((jnp.arange(b4)[:, None] % tuple_len)
          == (jnp.arange(tuple_len * hidden)[None, :] // hidden)).astype(f32)   # (B4, 4H)
    sel2 = ((jnp.arange(b4)[None, :] // tuple_len)
            == jnp.arange(batch)[:, None]).astype(f32)                          # (batch, B4)

    args = (patches_t, rp["conv_w"].T, rp["conv_b"].T, pool, rp["fc_w"], rp["fc_b"],
            item_text, wi_img, wi_txt, params["item_proj_b"],
            user_raw, params["user_proj_w"], params["user_proj_b"],
            p_item, p_user, graph_adj, params["gat_w"], params["gat_b"],
            f_h, gmat, kq_row, segmask,
            tp["wv"], tp["bv"], tp["wo"], tp["bo"],
            tp["ln1_g"], tp["ln1_b"], tp["w1"], tp["b1"], tp["w2"], tp["b2"],
            tp["ln2_g"], tp["ln2_b"],
            rep4, bm, sel2)

    out_shape = jax.ShapeDtypeStruct((batch, tuple_len * hidden), f32)
    return pl.pallas_call(
        _gat_tf_kernel,
        out_shape=out_shape,
        grid=(1,),
        in_specs=[pl.BlockSpec(a.shape, lambda i: (0, 0)) for a in args],
        out_specs=pl.BlockSpec(out_shape.shape, lambda i: (0, 0)),
        scratch_shapes=[pltpu.VMEM((n_nodes + 1, hidden), f32)],
        compiler_params=pltpu.CompilerParams(dimension_semantics=("arbitrary",)),
    )(*args)


# ----------------------------------------------------------------------------
# Full forward (loss_type=0, add_ctr_loss=False)
# ----------------------------------------------------------------------------
def gat_transformer_forward(params, graph_adj, input_emb_index, src_index,
                            subgraph_mask, item_image, item_text, attr_text,
                            user_emb_index):
    batch, tuple_len, _ = src_index.shape
    assert tuple_len == 4
    hidden = params["gat_w"].shape[0]

    # one fused kernel: backbone + projections + GAT + transformer-CLS; output (batch, 4*H)
    # with the four tuple positions [u | i | p | n] contiguous along lanes.
    g_wide = _fused_forward_cls(params, graph_adj, input_emb_index, src_index,
                                subgraph_mask, item_image, item_text, attr_text,
                                user_emb_index)

    pos_triplet = g_wide[:, : 3 * hidden]                                      # [u, i, p]
    neg_triplet = jnp.concatenate(
        [g_wide[:, : 2 * hidden], g_wide[:, 3 * hidden:]], axis=-1)            # [u, i, n]

    # scoring MLP left to XLA (a pallas_call for a (2,96)x(96,32) matmul is pure launch overhead)
    def mlp(x):
        h1 = jnp.dot(x, params["mlp_w1"]) + params["mlp_b1"]
        h1 = jax.nn.gelu(h1, approximate=False)      # exact erf GELU == torch.nn.GELU()
        return jnp.dot(h1, params["mlp_w2"]) + params["mlp_b2"]

    pos_logits = mlp(pos_triplet).reshape(batch)
    neg_logits = mlp(neg_triplet).reshape(batch)

    # loss_type == 0: BCEWithLogitsLoss(pos - neg, ones) = mean(softplus(-(pos - neg)))
    loss = jnp.mean(jax.nn.softplus(-(pos_logits - neg_logits)))
    logits = jnp.stack([neg_logits, pos_logits], axis=-1)
    return {"loss": loss, "logits": logits}


# ----------------------------------------------------------------------------
# Deterministic parameter init
# ----------------------------------------------------------------------------
def init_params(key, *, vocab_size, text_hidden, img_hidden, hidden, conv_ch, ffn):
    emb_in = text_hidden + img_hidden
    keys = iter(jax.random.split(key, 40))
    std = 0.02  # transformer.config.init_std stand-in

    def nrm(shape, s=std):
        return (s * jax.random.normal(next(keys), shape)).astype(jnp.float32)

    zeros = lambda shape: jnp.zeros(shape, jnp.float32)
    ones = lambda shape: jnp.ones(shape, jnp.float32)

    return {
        # TODO(synk): pretrained user embedding (torch.load) replaced by random table.
        "user_embedding": nrm((vocab_size, emb_in), 1.0),
        "user_proj_w": nrm((emb_in, hidden)), "user_proj_b": zeros((1, hidden)),
        "item_proj_w": nrm((emb_in, hidden)), "item_proj_b": zeros((1, hidden)),
        "resnet": {
            "conv_w": nrm((3 * 3 * 3, conv_ch)), "conv_b": zeros((1, conv_ch)),
            "fc_w": nrm((conv_ch, img_hidden)), "fc_b": zeros((1, img_hidden)),
        },
        # TODO(synk): original `gnn` is an arbitrary DGL GAT module; synthesized as one
        #             attention-free neighbor-aggregation layer over a dense normalized adjacency.
        "gat_w": nrm((hidden, hidden)), "gat_b": zeros((1, hidden)),
        "f_h": nrm((1, hidden)),  # f_h.data.normal_(0, init_std)
        # TODO(synk): original `transformer` is an external HF-style module; synthesized as one
        #             single-head post-LN encoder layer (CLS output only, all the model uses).
        "transformer": {
            "wq": nrm((hidden, hidden)), "bq": zeros((1, hidden)),
            "wk": nrm((hidden, hidden)), "bk": zeros((1, hidden)),
            "wv": nrm((hidden, hidden)), "bv": zeros((1, hidden)),
            "wo": nrm((hidden, hidden)), "bo": zeros((1, hidden)),
            "ln1_g": ones((1, hidden)), "ln1_b": zeros((1, hidden)),
            "w1": nrm((hidden, ffn)), "b1": zeros((1, ffn)),
            "w2": nrm((ffn, hidden)), "b2": zeros((1, hidden)),
            "ln2_g": ones((1, hidden)), "ln2_b": zeros((1, hidden)),
        },
        "mlp_w1": nrm((hidden * 3, hidden)), "mlp_b1": zeros((1, hidden)),
        "mlp_w2": nrm((hidden, 1)), "mlp_b2": zeros((1, 1)),
    }


if __name__ == "__main__":
    text_hidden, img_hidden, hidden = 16, 48, 32
    conv_ch, ffn = 8, 64
    vocab_size = 10
    num_images, num_attrs, num_users = 6, 4, 2
    batch, tuple_len, max_sg = 2, 4, 7
    n_nodes = num_images + num_attrs + num_users  # 12

    key = jax.random.PRNGKey(0)
    (k_param, k_img, k_text, k_attr,
     k_adj, k_src, k_mask, k_idx) = jax.random.split(key, 8)

    params = init_params(k_param, vocab_size=vocab_size, text_hidden=text_hidden,
                         img_hidden=img_hidden, hidden=hidden,
                         conv_ch=conv_ch, ffn=ffn)

    item_image = jax.random.normal(k_img, (num_images, 3, 16, 16), jnp.float32)  # NCHW
    item_text = jax.random.normal(k_text, (num_images, text_hidden), jnp.float32)
    attr_text = jax.random.normal(k_attr, (num_attrs, text_hidden), jnp.float32)
    user_emb_index = jnp.array([1, 7], dtype=jnp.int32)
    input_emb_index = jax.random.permutation(k_idx, n_nodes).astype(jnp.int32)

    # dense row-normalized adjacency (with self-loops) standing in for dgl.graph
    adj = (jax.random.uniform(k_adj, (n_nodes, n_nodes)) < 0.3).astype(jnp.float32)
    adj = adj + jnp.eye(n_nodes, dtype=jnp.float32)
    adj = adj / jnp.sum(adj, axis=-1, keepdims=True)

    src_index = jax.random.randint(k_src, (batch, tuple_len, max_sg), 0, n_nodes,
                                   dtype=jnp.int32)
    subgraph_mask = (jax.random.uniform(k_mask, (batch, tuple_len, max_sg)) < 0.8
                     ).astype(jnp.float32)

    out = jax.jit(gat_transformer_forward)(
        params, adj, input_emb_index, src_index, subgraph_mask,
        item_image, item_text, attr_text, user_emb_index)
    jax.block_until_ready(out["loss"])

    assert out["logits"].shape == (batch, 2)
    assert out["loss"].shape == ()
    print("KERNEL_OK")
</pallas_src>

<mosaic_0001>
module attributes {stable_mosaic.version = 11 : i64} {
  func.func @_gat_tf_kernel(%arg0: i32, %arg1: memref<27x384xf32, #tpu.memory_space<vmem>>, %arg2: memref<8x27xf32, #tpu.memory_space<vmem>>, %arg3: memref<8x1xf32, #tpu.memory_space<vmem>>, %arg4: memref<6x384xf32, #tpu.memory_space<vmem>>, %arg5: memref<8x48xf32, #tpu.memory_space<vmem>>, %arg6: memref<1x48xf32, #tpu.memory_space<vmem>>, %arg7: memref<6x16xf32, #tpu.memory_space<vmem>>, %arg8: memref<48x32xf32, #tpu.memory_space<vmem>>, %arg9: memref<16x32xf32, #tpu.memory_space<vmem>>, %arg10: memref<1x32xf32, #tpu.memory_space<vmem>>, %arg11: memref<2x64xf32, #tpu.memory_space<vmem>>, %arg12: memref<64x32xf32, #tpu.memory_space<vmem>>, %arg13: memref<1x32xf32, #tpu.memory_space<vmem>>, %arg14: memref<12x6xf32, #tpu.memory_space<vmem>>, %arg15: memref<12x2xf32, #tpu.memory_space<vmem>>, %arg16: memref<12x12xf32, #tpu.memory_space<vmem>>, %arg17: memref<32x32xf32, #tpu.memory_space<vmem>>, %arg18: memref<1x32xf32, #tpu.memory_space<vmem>>, %arg19: memref<1x32xf32, #tpu.memory_space<vmem>>, %arg20: memref<64x13xf32, #tpu.memory_space<vmem>>, %arg21: memref<1x32xf32, #tpu.memory_space<vmem>>, %arg22: memref<8x64xf32, #tpu.memory_space<vmem>>, %arg23: memref<32x32xf32, #tpu.memory_space<vmem>>, %arg24: memref<1x32xf32, #tpu.memory_space<vmem>>, %arg25: memref<32x32xf32, #tpu.memory_space<vmem>>, %arg26: memref<1x32xf32, #tpu.memory_space<vmem>>, %arg27: memref<1x32xf32, #tpu.memory_space<vmem>>, %arg28: memref<1x32xf32, #tpu.memory_space<vmem>>, %arg29: memref<32x64xf32, #tpu.memory_space<vmem>>, %arg30: memref<1x64xf32, #tpu.memory_space<vmem>>, %arg31: memref<64x32xf32, #tpu.memory_space<vmem>>, %arg32: memref<1x32xf32, #tpu.memory_space<vmem>>, %arg33: memref<1x32xf32, #tpu.memory_space<vmem>>, %arg34: memref<1x32xf32, #tpu.memory_space<vmem>>, %arg35: memref<32x128xf32, #tpu.memory_space<vmem>>, %arg36: memref<8x128xf32, #tpu.memory_space<vmem>>, %arg37: memref<2x8xf32, #tpu.memory_space<vmem>>, %arg38: memref<2x128xf32, #tpu.memory_space<vmem>>, %arg39: memref<13x32xf32, #tpu.memory_space<vmem>>) attributes {dimension_semantics = [#tpu.dimension_semantics<arbitrary>], iteration_bounds = array<i64: 1>, scalar_prefetch = 0 : i64, scratch_operands = 1 : i64, tpu.core_type = #tpu.core_type<tc>, window_params = [{pipeline_mode = #tpu.pipeline_mode<synchronous>, transform_indices = @transform_0, window_bounds = array<i64: 27, 384>}, {pipeline_mode = #tpu.pipeline_mode<synchronous>, transform_indices = @transform_1, window_bounds = array<i64: 8, 27>}, {pipeline_mode = #tpu.pipeline_mode<synchronous>, transform_indices = @transform_2, window_bounds = array<i64: 8, 1>}, {pipeline_mode = #tpu.pipeline_mode<synchronous>, transform_indices = @transform_3, window_bounds = array<i64: 6, 384>}, {pipeline_mode = #tpu.pipeline_mode<synchronous>, transform_indices = @transform_4, window_bounds = array<i64: 8, 48>}, {pipeline_mode = #tpu.pipeline_mode<synchronous>, transform_indices = @transform_5, window_bounds = array<i64: 1, 48>}, {pipeline_mode = #tpu.pipeline_mode<synchronous>, transform_indices = @transform_6, window_bounds = array<i64: 6, 16>}, {pipeline_mode = #tpu.pipeline_mode<synchronous>, transform_indices = @transform_7, window_bounds = array<i64: 48, 32>}, {pipeline_mode = #tpu.pipeline_mode<synchronous>, transform_indices = @transform_8, window_bounds = array<i64: 16, 32>}, {pipeline_mode = #tpu.pipeline_mode<synchronous>, transform_indices = @transform_9, window_bounds = array<i64: 1, 32>}, {pipeline_mode = #tpu.pipeline_mode<synchronous>, transform_indices = @transform_10, window_bounds = array<i64: 2, 64>}, {pipeline_mode = #tpu.pipeline_mode<synchronous>, transform_indices = @transform_11, window_bounds = array<i64: 64, 32>}, {pipeline_mode = #tpu.pipeline_mode<synchronous>, transform_indices = @transform_12, window_bounds = array<i64: 1, 32>}, {pipeline_mode = #tpu.pipeline_mode<synchronous>, transform_indices = @transform_13, window_bounds = array<i64: 12, 6>}, {pipeline_mode = #tpu.pipeline_mode<synchronous>, transform_indices = @transform_14, window_bounds = array<i64: 12, 2>}, {pipeline_mode = #tpu.pipeline_mode<synchronous>, transform_indices = @transform_15, window_bounds = array<i64: 12, 12>}, {pipeline_mode = #tpu.pipeline_mode<synchronous>, transform_indices = @transform_16, window_bounds = array<i64: 32, 32>}, {pipeline_mode = #tpu.pipeline_mode<synchronous>, transform_indices = @transform_17, window_bounds = array<i64: 1, 32>}, {pipeline_mode = #tpu.pipeline_mode<synchronous>, transform_indices = @transform_18, window_bounds = array<i64: 1, 32>}, {pipeline_mode = #tpu.pipeline_mode<synchronous>, transform_indices = @transform_19, window_bounds = array<i64: 64, 13>}, {pipeline_mode = #tpu.pipeline_mode<synchronous>, transform_indices = @transform_20, window_bounds = array<i64: 1, 32>}, {pipeline_mode = #tpu.pipeline_mode<synchronous>, transform_indices = @transform_21, window_bounds = array<i64: 8, 64>}, {pipeline_mode = #tpu.pipeline_mode<synchronous>, transform_indices = @transform_22, window_bounds = array<i64: 32, 32>}, {pipeline_mode = #tpu.pipeline_mode<synchronous>, transform_indices = @transform_23, window_bounds = array<i64: 1, 32>}, {pipeline_mode = #tpu.pipeline_mode<synchronous>, transform_indices = @transform_24, window_bounds = array<i64: 32, 32>}, {pipeline_mode = #tpu.pipeline_mode<synchronous>, transform_indices = @transform_25, window_bounds = array<i64: 1, 32>}, {pipeline_mode = #tpu.pipeline_mode<synchronous>, transform_indices = @transform_26, window_bounds = array<i64: 1, 32>}, {pipeline_mode = #tpu.pipeline_mode<synchronous>, transform_indices = @transform_27, window_bounds = array<i64: 1, 32>}, {pipeline_mode = #tpu.pipeline_mode<synchronous>, transform_indices = @transform_28, window_bounds = array<i64: 32, 64>}, {pipeline_mode = #tpu.pipeline_mode<synchronous>, transform_indices = @transform_29, window_bounds = array<i64: 1, 64>}, {pipeline_mode = #tpu.pipeline_mode<synchronous>, transform_indices = @transform_30, window_bounds = array<i64: 64, 32>}, {pipeline_mode = #tpu.pipeline_mode<synchronous>, transform_indices = @transform_31, window_bounds = array<i64: 1, 32>}, {pipeline_mode = #tpu.pipeline_mode<synchronous>, transform_indices = @transform_32, window_bounds = array<i64: 1, 32>}, {pipeline_mode = #tpu.pipeline_mode<synchronous>, transform_indices = @transform_33, window_bounds = array<i64: 1, 32>}, {pipeline_mode = #tpu.pipeline_mode<synchronous>, transform_indices = @transform_34, window_bounds = array<i64: 32, 128>}, {pipeline_mode = #tpu.pipeline_mode<synchronous>, transform_indices = @transform_35, window_bounds = array<i64: 8, 128>}, {pipeline_mode = #tpu.pipeline_mode<synchronous>, transform_indices = @transform_36, window_bounds = array<i64: 2, 8>}, {pipeline_mode = #tpu.pipeline_mode<synchronous>, transform_indices = @transform_37, window_bounds = array<i64: 2, 128>}]} {
    %c0 = arith.constant 0 : index
    %c0_0 = arith.constant 0 : index
    %0 = vector.load %arg2[%c0, %c0_0] : memref<8x27xf32, #tpu.memory_space<vmem>>, vector<8x27xf32>
    %c0_1 = arith.constant 0 : index
    %c0_2 = arith.constant 0 : index
    %1 = vector.load %arg1[%c0_1, %c0_2] : memref<27x384xf32, #tpu.memory_space<vmem>>, vector<27x384xf32>
    %cst = arith.constant dense<0.000000e+00> : vector<8x384xf32>
    %2 = tpu.matmul %0, %1, %cst {dimension_numbers = #tpu.dot_dimension_numbers<[1], [0], [0], [1], [0, 0, 1, 1], [], []>} : vector<8x27xf32>, vector<27x384xf32>, vector<8x384xf32> -> vector<8x384xf32>
    %c0_3 = arith.constant 0 : index
    %c0_4 = arith.constant 0 : index
    %3 = vector.load %arg3[%c0_3, %c0_4] : memref<8x1xf32, #tpu.memory_space<vmem>>, vector<8x1xf32>
    %4 = vector.broadcast %3 : vector<8x1xf32> to vector<8x384xf32>
    %5 = arith.addf %2, %4 : vector<8x384xf32>
    %cst_5 = arith.constant 0.000000e+00 : f32
    %6 = vector.broadcast %cst_5 : f32 to vector<8x384xf32>
    %7 = arith.maximumf %5, %6 : vector<8x384xf32>
    %c0_6 = arith.constant 0 : index
    %c0_7 = arith.constant 0 : index
    %8 = vector.load %arg4[%c0_6, %c0_7] : memref<6x384xf32, #tpu.memory_space<vmem>>, vector<6x384xf32>
    %cst_8 = arith.constant dense<0.000000e+00> : vector<6x8xf32>
    %9 = tpu.matmul %8, %7, %cst_8 {dimension_numbers = #tpu.dot_dimension_numbers<[1], [1], [0], [0], [0, 0, 1, 0], [], []>} : vector<6x384xf32>, vector<8x384xf32>, vector<6x8xf32> -> vector<6x8xf32>
    %c0_9 = arith.constant 0 : index
    %c0_10 = arith.constant 0 : index
    %10 = vector.load %arg5[%c0_9, %c0_10] : memref<8x48xf32, #tpu.memory_space<vmem>>, vector<8x48xf32>
    %cst_11 = arith.constant dense<0.000000e+00> : vector<6x48xf32>
    %11 = tpu.matmul %9, %10, %cst_11 {dimension_numbers = #tpu.dot_dimension_numbers<[1], [0], [0], [1], [0, 0, 1, 1], [], []>} : vector<6x8xf32>, vector<8x48xf32>, vector<6x48xf32> -> vector<6x48xf32>
    %c0_12 = arith.constant 0 : index
    %c0_13 = arith.constant 0 : index
    %12 = vector.load %arg6[%c0_12, %c0_13] : memref<1x48xf32, #tpu.memory_space<vmem>>, vector<1x48xf32>
    %13 = vector.broadcast %12 : vector<1x48xf32> to vector<6x48xf32>
    %14 = arith.addf %11, %13 : vector<6x48xf32>
    %c0_14 = arith.constant 0 : index
    %c0_15 = arith.constant 0 : index
    %15 = vector.load %arg8[%c0_14, %c0_15] : memref<48x32xf32, #tpu.memory_space<vmem>>, vector<48x32xf32>
    %cst_16 = arith.constant dense<0.000000e+00> : vector<6x32xf32>
    %16 = tpu.matmul %14, %15, %cst_16 {dimension_numbers = #tpu.dot_dimension_numbers<[1], [0], [0], [1], [0, 0, 1, 1], [], []>} : vector<6x48xf32>, vector<48x32xf32>, vector<6x32xf32> -> vector<6x32xf32>
    %c0_17 = arith.constant 0 : index
    %c0_18 = arith.constant 0 : index
    %17 = vector.load %arg7[%c0_17, %c0_18] : memref<6x16xf32, #tpu.memory_space<vmem>>, vector<6x16xf32>
    %c0_19 = arith.constant 0 : index
    %c0_20 = arith.constant 0 : index
    %18 = vector.load %arg9[%c0_19, %c0_20] : memref<16x32xf32, #tpu.memory_space<vmem>>, vector<16x32xf32>
    %cst_21 = arith.constant dense<0.000000e+00> : vector<6x32xf32>
    %19 = tpu.matmul %17, %18, %cst_21 {dimension_numbers = #tpu.dot_dimension_numbers<[1], [0], [0], [1], [0, 0, 1, 1], [], []>} : vector<6x16xf32>, vector<16x32xf32>, vector<6x32xf32> -> vector<6x32xf32>
    %20 = arith.addf %16, %19 : vector<6x32xf32>
    %c0_22 = arith.constant 0 : index
    %c0_23 = arith.constant 0 : index
    %21 = vector.load %arg10[%c0_22, %c0_23] : memref<1x32xf32, #tpu.memory_space<vmem>>, vector<1x32xf32>
    %22 = vector.broadcast %21 : vector<1x32xf32> to vector<6x32xf32>
    %23 = arith.addf %20, %22 : vector<6x32xf32>
    %c0_24 = arith.constant 0 : index
    %c0_25 = arith.constant 0 : index
    %24 = vector.load %arg11[%c0_24, %c0_25] : memref<2x64xf32, #tpu.memory_space<vmem>>, vector<2x64xf32>
    %c0_26 = arith.constant 0 : index
    %c0_27 = arith.constant 0 : index
    %25 = vector.load %arg12[%c0_26, %c0_27] : memref<64x32xf32, #tpu.memory_space<vmem>>, vector<64x32xf32>
    %cst_28 = arith.constant dense<0.000000e+00> : vector<2x32xf32>
    %26 = tpu.matmul %24, %25, %cst_28 {dimension_numbers = #tpu.dot_dimension_numbers<[1], [0], [0], [1], [0, 0, 1, 1], [], []>} : vector<2x64xf32>, vector<64x32xf32>, vector<2x32xf32> -> vector<2x32xf32>
    %c0_29 = arith.constant 0 : index
    %c0_30 = arith.constant 0 : index
    %27 = vector.load %arg13[%c0_29, %c0_30] : memref<1x32xf32, #tpu.memory_space<vmem>>, vector<1x32xf32>
    %28 = vector.broadcast %27 : vector<1x32xf32> to vector<2x32xf32>
    %29 = arith.addf %26, %28 : vector<2x32xf32>
    %c0_31 = arith.constant 0 : index
    %c0_32 = arith.constant 0 : index
    %30 = vector.load %arg14[%c0_31, %c0_32] : memref<12x6xf32, #tpu.memory_space<vmem>>, vector<12x6xf32>
    %cst_33 = arith.constant dense<0.000000e+00> : vector<12x32xf32>
    %31 = tpu.matmul %30, %23, %cst_33 {dimension_numbers = #tpu.dot_dimension_numbers<[1], [0], [0], [1], [0, 0, 1, 1], [], []>} : vector<12x6xf32>, vector<6x32xf32>, vector<12x32xf32> -> vector<12x32xf32>
    %c0_34 = arith.constant 0 : index
    %c0_35 = arith.constant 0 : index
    %32 = vector.load %arg15[%c0_34, %c0_35] : memref<12x2xf32, #tpu.memory_space<vmem>>, vector<12x2xf32>
    %cst_36 = arith.constant dense<0.000000e+00> : vector<12x32xf32>
    %33 = tpu.matmul %32, %29, %cst_36 {dimension_numbers = #tpu.dot_dimension_numbers<[1], [0], [0], [1], [0, 0, 1, 1], [], []>} : vector<12x2xf32>, vector<2x32xf32>, vector<12x32xf32> -> vector<12x32xf32>
    %34 = arith.addf %31, %33 : vector<12x32xf32>
    %c0_37 = arith.constant 0 : index
    %c0_38 = arith.constant 0 : index
    %35 = vector.load %arg17[%c0_37, %c0_38] : memref<32x32xf32, #tpu.memory_space<vmem>>, vector<32x32xf32>
    %cst_39 = arith.constant dense<0.000000e+00> : vector<12x32xf32>
    %36 = tpu.matmul %34, %35, %cst_39 {dimension_numbers = #tpu.dot_dimension_numbers<[1], [0], [0], [1], [0, 0, 1, 1], [], []>} : vector<12x32xf32>, vector<32x32xf32>, vector<12x32xf32> -> vector<12x32xf32>
    %c0_40 = arith.constant 0 : index
    %c0_41 = arith.constant 0 : index
    %37 = vector.load %arg18[%c0_40, %c0_41] : memref<1x32xf32, #tpu.memory_space<vmem>>, vector<1x32xf32>
    %38 = vector.broadcast %37 : vector<1x32xf32> to vector<12x32xf32>
    %39 = arith.addf %36, %38 : vector<12x32xf32>
    %c0_42 = arith.constant 0 : index
    %c0_43 = arith.constant 0 : index
    %40 = vector.load %arg16[%c0_42, %c0_43] : memref<12x12xf32, #tpu.memory_space<vmem>>, vector<12x12xf32>
    %cst_44 = arith.constant dense<0.000000e+00> : vector<12x32xf32>
    %41 = tpu.matmul %40, %39, %cst_44 {dimension_numbers = #tpu.dot_dimension_numbers<[1], [0], [0], [1], [0, 0, 1, 1], [], []>} : vector<12x12xf32>, vector<12x32xf32>, vector<12x32xf32> -> vector<12x32xf32>
    %cst_45 = arith.constant 0.000000e+00 : f32
    %42 = vector.broadcast %cst_45 : f32 to vector<12x32xf32>
    %43 = arith.maximumf %41, %42 : vector<12x32xf32>
    %c0_46 = arith.constant 0 : index
    %c0_47 = arith.constant 0 : index
    %44 = vector.load %arg39[%c0_46, %c0_47] : memref<13x32xf32, #tpu.memory_space<vmem>>, vector<12x32xf32>
    tpu.vector_store %arg39[%c0_46, %c0_47], %43 {strides = array<i32>} : memref<13x32xf32, #tpu.memory_space<vmem>>, vector<12x32xf32>,
    %c0_48 = arith.constant 0 : index
    %c0_49 = arith.constant 0 : index
    %45 = vector.load %arg19[%c0_48, %c0_49] : memref<1x32xf32, #tpu.memory_space<vmem>>, vector<1x32xf32>
    %c12 = arith.constant 12 : index
    %c0_50 = arith.constant 0 : index
    %46 = vector.load %arg39[%c12, %c0_50] : memref<13x32xf32, #tpu.memory_space<vmem>>, vector<1x32xf32>
    tpu.vector_store %arg39[%c12, %c0_50], %45 {strides = array<i32>} : memref<13x32xf32, #tpu.memory_space<vmem>>, vector<1x32xf32>,
    %c0_51 = arith.constant 0 : index
    %c0_52 = arith.constant 0 : index
    %47 = vector.load %arg39[%c0_51, %c0_52] : memref<13x32xf32, #tpu.memory_space<vmem>>, vector<13x32xf32>
    %c0_53 = arith.constant 0 : index
    %c0_54 = arith.constant 0 : index
    %48 = vector.load %arg20[%c0_53, %c0_54] : memref<64x13xf32, #tpu.memory_space<vmem>>, vector<64x13xf32>
    %cst_55 = arith.constant dense<0.000000e+00> : vector<64x32xf32>
    %49 = tpu.matmul %48, %47, %cst_55 {dimension_numbers = #tpu.dot_dimension_numbers<[1], [0], [0], [1], [0, 0, 1, 1], [], []>} : vector<64x13xf32>, vector<13x32xf32>, vector<64x32xf32> -> vector<64x32xf32>
    %c0_56 = arith.constant 0 : index
    %c0_57 = arith.constant 0 : index
    %50 = vector.load %arg21[%c0_56, %c0_57] : memref<1x32xf32, #tpu.memory_space<vmem>>, vector<1x32xf32>
    %cst_58 = arith.constant dense<0.000000e+00> : vector<1x64xf32>
    %51 = tpu.matmul %50, %49, %cst_58 {dimension_numbers = #tpu.dot_dimension_numbers<[1], [1], [0], [0], [0, 0, 1, 0], [], []>} : vector<1x32xf32>, vector<64x32xf32>, vector<1x64xf32> -> vector<1x64xf32>
    %c0_59 = arith.constant 0 : index
    %c0_60 = arith.constant 0 : index
    %52 = vector.load %arg22[%c0_59, %c0_60] : memref<8x64xf32, #tpu.memory_space<vmem>>, vector<8x64xf32>
    %53 = vector.broadcast %51 : vector<1x64xf32> to vector<8x64xf32>
    %54 = arith.addf %53, %52 : vector<8x64xf32>
    %cst_61 = arith.constant dense<0xFF800000> : vector<8xf32>
    %55 = vector.multi_reduction <maximumf>, %54, %cst_61 [1] : vector<8x64xf32> to vector<8xf32>
    %56 = vector.shape_cast %55 : vector<8xf32> to vector<8x1xf32>
    %57 = vector.broadcast %56 : vector<8x1xf32> to vector<8x64xf32>
    %58 = arith.subf %54, %57 : vector<8x64xf32>
    %59 = math.exp %58 : vector<8x64xf32>
    %cst_62 = arith.constant dense<0.000000e+00> : vector<8xf32>
    %60 = vector.multi_reduction <add>, %59, %cst_62 [1] : vector<8x64xf32> to vector<8xf32>
    %61 = vector.shape_cast %60 : vector<8xf32> to vector<8x1xf32>
    %c0_63 = arith.constant 0 : index
    %c0_64 = arith.constant 0 : index
    %62 = vector.load %arg23[%c0_63, %c0_64] : memref<32x32xf32, #tpu.memory_space<vmem>>, vector<32x32xf32>
    %cst_65 = arith.constant dense<0.000000e+00> : vector<64x32xf32>
    %63 = tpu.matmul %49, %62, %cst_65 {dimension_numbers = #tpu.dot_dimension_numbers<[1], [0], [0], [1], [0, 0, 1, 1], [], []>} : vector<64x32xf32>, vector<32x32xf32>, vector<64x32xf32> -> vector<64x32xf32>
    %c0_66 = arith.constant 0 : index
    %c0_67 = arith.constant 0 : index
    %64 = vector.load %arg24[%c0_66, %c0_67] : memref<1x32xf32, #tpu.memory_space<vmem>>, vector<1x32xf32>
    %65 = vector.broadcast %64 : vector<1x32xf32> to vector<64x32xf32>
    %66 = arith.addf %63, %65 : vector<64x32xf32>
    %cst_68 = arith.constant dense<0.000000e+00> : vector<8x32xf32>
    %67 = tpu.matmul %59, %66, %cst_68 {dimension_numbers = #tpu.dot_dimension_numbers<[1], [0], [0], [1], [0, 0, 1, 1], [], []>} : vector<8x64xf32>, vector<64x32xf32>, vector<8x32xf32> -> vector<8x32xf32>
    %68 = vector.broadcast %61 : vector<8x1xf32> to vector<8x32xf32>
    %69 = arith.divf %67, %68 : vector<8x32xf32>
    %c0_69 = arith.constant 0 : index
    %c0_70 = arith.constant 0 : index
    %70 = vector.load %arg25[%c0_69, %c0_70] : memref<32x32xf32, #tpu.memory_space<vmem>>, vector<32x32xf32>
    %cst_71 = arith.constant dense<0.000000e+00> : vector<8x32xf32>
    %71 = tpu.matmul %69, %70, %cst_71 {dimension_numbers = #tpu.dot_dimension_numbers<[1], [0], [0], [1], [0, 0, 1, 1], [], []>} : vector<8x32xf32>, vector<32x32xf32>, vector<8x32xf32> -> vector<8x32xf32>
    %c0_72 = arith.constant 0 : index
    %c0_73 = arith.constant 0 : index
    %72 = vector.load %arg26[%c0_72, %c0_73] : memref<1x32xf32, #tpu.memory_space<vmem>>, vector<1x32xf32>
    %73 = vector.broadcast %72 : vector<1x32xf32> to vector<8x32xf32>
    %74 = arith.addf %71, %73 : vector<8x32xf32>
    %c0_74 = arith.constant 0 : index
    %c0_75 = arith.constant 0 : index
    %75 = vector.load %arg19[%c0_74, %c0_75] : memref<1x32xf32, #tpu.memory_space<vmem>>, vector<1x32xf32>
    %76 = vector.broadcast %75 : vector<1x32xf32> to vector<8x32xf32>
    %77 = arith.addf %76, %74 : vector<8x32xf32>
    %cst_76 = arith.constant dense<0.000000e+00> : vector<8xf32>
    %78 = vector.multi_reduction <add>, %77, %cst_76 [1] : vector<8x32xf32> to vector<8xf32>
    %79 = vector.shape_cast %78 : vector<8xf32> to vector<8x1xf32>
    %cst_77 = arith.constant 3.200000e+01 : f32
    %80 = vector.broadcast %cst_77 : f32 to vector<8x1xf32>
    %81 = arith.divf %79, %80 : vector<8x1xf32>
    %82 = vector.broadcast %81 : vector<8x1xf32> to vector<8x32xf32>
    %83 = arith.subf %77, %82 : vector<8x32xf32>
    %84 = arith.mulf %83, %83 : vector<8x32xf32>
    %cst_78 = arith.constant dense<0.000000e+00> : vector<8xf32>
    %85 = vector.multi_reduction <add>, %84, %cst_78 [1] : vector<8x32xf32> to vector<8xf32>
    %86 = vector.shape_cast %85 : vector<8xf32> to vector<8x1xf32>
    %cst_79 = arith.constant 3.200000e+01 : f32
    %87 = vector.broadcast %cst_79 : f32 to vector<8x1xf32>
    %88 = arith.divf %86, %87 : vector<8x1xf32>
    %89 = vector.broadcast %81 : vector<8x1xf32> to vector<8x32xf32>
    %90 = arith.subf %77, %89 : vector<8x32xf32>
    %cst_80 = arith.constant 9.99999974E-6 : f32
    %91 = vector.broadcast %cst_80 : f32 to vector<8x1xf32>
    %92 = arith.addf %88, %91 : vector<8x1xf32>
    %93 = math.rsqrt %92 : vector<8x1xf32>
    %94 = vector.broadcast %93 : vector<8x1xf32> to vector<8x32xf32>
    %95 = arith.mulf %90, %94 : vector<8x32xf32>
    %c0_81 = arith.constant 0 : index
    %c0_82 = arith.constant 0 : index
    %96 = vector.load %arg27[%c0_81, %c0_82] : memref<1x32xf32, #tpu.memory_space<vmem>>, vector<1x32xf32>
    %97 = vector.broadcast %96 : vector<1x32xf32> to vector<8x32xf32>
    %98 = arith.mulf %95, %97 : vector<8x32xf32>
    %c0_83 = arith.constant 0 : index
    %c0_84 = arith.constant 0 : index
    %99 = vector.load %arg28[%c0_83, %c0_84] : memref<1x32xf32, #tpu.memory_space<vmem>>, vector<1x32xf32>
    %100 = vector.broadcast %99 : vector<1x32xf32> to vector<8x32xf32>
    %101 = arith.addf %98, %100 : vector<8x32xf32>
    %c0_85 = arith.constant 0 : index
    %c0_86 = arith.constant 0 : index
    %102 = vector.load %arg29[%c0_85, %c0_86] : memref<32x64xf32, #tpu.memory_space<vmem>>, vector<32x64xf32>
    %cst_87 = arith.constant dense<0.000000e+00> : vector<8x64xf32>
    %103 = tpu.matmul %101, %102, %cst_87 {dimension_numbers = #tpu.dot_dimension_numbers<[1], [0], [0], [1], [0, 0, 1, 1], [], []>} : vector<8x32xf32>, vector<32x64xf32>, vector<8x64xf32> -> vector<8x64xf32>
    %c0_88 = arith.constant 0 : index
    %c0_89 = arith.constant 0 : index
    %104 = vector.load %arg30[%c0_88, %c0_89] : memref<1x64xf32, #tpu.memory_space<vmem>>, vector<1x64xf32>
    %105 = vector.broadcast %104 : vector<1x64xf32> to vector<8x64xf32>
    %106 = arith.addf %103, %105 : vector<8x64xf32>
    %107 = arith.mulf %106, %106 : vector<8x64xf32>
    %108 = arith.mulf %106, %107 : vector<8x64xf32>
    %cst_90 = arith.constant 4.471500e-02 : f32
    %109 = vector.broadcast %cst_90 : f32 to vector<8x64xf32>
    %110 = arith.mulf %109, %108 : vector<8x64xf32>
    %111 = arith.addf %106, %110 : vector<8x64xf32>
    %cst_91 = arith.constant 0.797884583 : f32
    %112 = vector.broadcast %cst_91 : f32 to vector<8x64xf32>
    %113 = arith.mulf %112, %111 : vector<8x64xf32>
    %114 = math.tanh %113 : vector<8x64xf32>
    %cst_92 = arith.constant 1.000000e+00 : f32
    %115 = vector.broadcast %cst_92 : f32 to vector<8x64xf32>
    %116 = arith.addf %115, %114 : vector<8x64xf32>
    %cst_93 = arith.constant 5.000000e-01 : f32
    %117 = vector.broadcast %cst_93 : f32 to vector<8x64xf32>
    %118 = arith.mulf %117, %116 : vector<8x64xf32>
    %119 = arith.mulf %106, %118 : vector<8x64xf32>
    %c0_94 = arith.constant 0 : index
    %c0_95 = arith.constant 0 : index
    %120 = vector.load %arg31[%c0_94, %c0_95] : memref<64x32xf32, #tpu.memory_space<vmem>>, vector<64x32xf32>
    %cst_96 = arith.constant dense<0.000000e+00> : vector<8x32xf32>
    %121 = tpu.matmul %119, %120, %cst_96 {dimension_numbers = #tpu.dot_dimension_numbers<[1], [0], [0], [1], [0, 0, 1, 1], [], []>} : vector<8x64xf32>, vector<64x32xf32>, vector<8x32xf32> -> vector<8x32xf32>
    %c0_97 = arith.constant 0 : index
    %c0_98 = arith.constant 0 : index
    %122 = vector.load %arg32[%c0_97, %c0_98] : memref<1x32xf32, #tpu.memory_space<vmem>>, vector<1x32xf32>
    %123 = vector.broadcast %122 : vector<1x32xf32> to vector<8x32xf32>
    %124 = arith.addf %121, %123 : vector<8x32xf32>
    %125 = arith.addf %101, %124 : vector<8x32xf32>
    %cst_99 = arith.constant dense<0.000000e+00> : vector<8xf32>
    %126 = vector.multi_reduction <add>, %125, %cst_99 [1] : vector<8x32xf32> to vector<8xf32>
    %127 = vector.shape_cast %126 : vector<8xf32> to vector<8x1xf32>
    %cst_100 = arith.constant 3.200000e+01 : f32
    %128 = vector.broadcast %cst_100 : f32 to vector<8x1xf32>
    %129 = arith.divf %127, %128 : vector<8x1xf32>
    %130 = vector.broadcast %129 : vector<8x1xf32> to vector<8x32xf32>
    %131 = arith.subf %125, %130 : vector<8x32xf32>
    %132 = arith.mulf %131, %131 : vector<8x32xf32>
    %cst_101 = arith.constant dense<0.000000e+00> : vector<8xf32>
    %133 = vector.multi_reduction <add>, %132, %cst_101 [1] : vector<8x32xf32> to vector<8xf32>
    %134 = vector.shape_cast %133 : vector<8xf32> to vector<8x1xf32>
    %cst_102 = arith.constant 3.200000e+01 : f32
    %135 = vector.broadcast %cst_102 : f32 to vector<8x1xf32>
    %136 = arith.divf %134, %135 : vector<8x1xf32>
    %137 = vector.broadcast %129 : vector<8x1xf32> to vector<8x32xf32>
    %138 = arith.subf %125, %137 : vector<8x32xf32>
    %cst_103 = arith.constant 9.99999974E-6 : f32
    %139 = vector.broadcast %cst_103 : f32 to vector<8x1xf32>
    %140 = arith.addf %136, %139 : vector<8x1xf32>
    %141 = math.rsqrt %140 : vector<8x1xf32>
    %142 = vector.broadcast %141 : vector<8x1xf32> to vector<8x32xf32>
    %143 = arith.mulf %138, %142 : vector<8x32xf32>
    %c0_104 = arith.constant 0 : index
    %c0_105 = arith.constant 0 : index
    %144 = vector.load %arg33[%c0_104, %c0_105] : memref<1x32xf32, #tpu.memory_space<vmem>>, vector<1x32xf32>
    %145 = vector.broadcast %144 : vector<1x32xf32> to vector<8x32xf32>
    %146 = arith.mulf %143, %145 : vector<8x32xf32>
    %c0_106 = arith.constant 0 : index
    %c0_107 = arith.constant 0 : index
    %147 = vector.load %arg34[%c0_106, %c0_107] : memref<1x32xf32, #tpu.memory_space<vmem>>, vector<1x32xf32>
    %148 = vector.broadcast %147 : vector<1x32xf32> to vector<8x32xf32>
    %149 = arith.addf %146, %148 : vector<8x32xf32>
    %c0_108 = arith.constant 0 : index
    %c0_109 = arith.constant 0 : index
    %150 = vector.load %arg35[%c0_108, %c0_109] : memref<32x128xf32, #tpu.memory_space<vmem>>, vector<32x128xf32>
    %cst_110 = arith.constant dense<0.000000e+00> : vector<8x128xf32>
    %151 = tpu.matmul %149, %150, %cst_110 {dimension_numbers = #tpu.dot_dimension_numbers<[1], [0], [0], [1], [0, 0, 1, 1], [], []>} : vector<8x32xf32>, vector<32x128xf32>, vector<8x128xf32> -> vector<8x128xf32>
    %c0_111 = arith.constant 0 : index
    %c0_112 = arith.constant 0 : index
    %152 = vector.load %arg37[%c0_111, %c0_112] : memref<2x8xf32, #tpu.memory_space<vmem>>, vector<2x8xf32>
    %c0_113 = arith.constant 0 : index
    %c0_114 = arith.constant 0 : index
    %153 = vector.load %arg36[%c0_113, %c0_114] : memref<8x128xf32, #tpu.memory_space<vmem>>, vector<8x128xf32>
    %154 = arith.mulf %151, %153 : vector<8x128xf32>
    %cst_115 = arith.constant dense<0.000000e+00> : vector<2x128xf32>
    %155 = tpu.matmul %152, %154, %cst_115 {dimension_numbers = #tpu.dot_dimension_numbers<[1], [0], [0], [1], [0, 0, 1, 1], [], []>} : vector<2x8xf32>, vector<8x128xf32>, vector<2x128xf32> -> vector<2x128xf32>
    %c0_116 = arith.constant 0 : index
    %c0_117 = arith.constant 0 : index
    %156 = vector.load %arg38[%c0_116, %c0_117] : memref<2x128xf32, #tpu.memory_space<vmem>>, vector<2x128xf32>
    tpu.vector_store %arg38[%c0_116, %c0_117], %155 {strides = array<i32>} : memref<2x128xf32, #tpu.memory_space<vmem>>, vector<2x128xf32>,
    return
  }
  func.func @transform_0(%arg0: i32) -> (i32, i32) {
    %c0_i32 = arith.constant 0 : i32
    %c0_i32_0 = arith.constant 0 : i32
    %c0_i32_1 = arith.constant 0 : i32
    return %c0_i32, %c0_i32_0 : i32, i32
  }
  func.func @transform_1(%arg0: i32) -> (i32, i32) {
    %c0_i32 = arith.constant 0 : i32
    %c0_i32_0 = arith.constant 0 : i32
    %c0_i32_1 = arith.constant 0 : i32
    return %c0_i32, %c0_i32_0 : i32, i32
  }
  func.func @transform_2(%arg0: i32) -> (i32, i32) {
    %c0_i32 = arith.constant 0 : i32
    %c0_i32_0 = arith.constant 0 : i32
    %c0_i32_1 = arith.constant 0 : i32
    return %c0_i32, %c0_i32_0 : i32, i32
  }
  func.func @transform_3(%arg0: i32) -> (i32, i32) {
    %c0_i32 = arith.constant 0 : i32
    %c0_i32_0 = arith.constant 0 : i32
    %c0_i32_1 = arith.constant 0 : i32
    return %c0_i32, %c0_i32_0 : i32, i32
  }
  func.func @transform_4(%arg0: i32) -> (i32, i32) {
    %c0_i32 = arith.constant 0 : i32
    %c0_i32_0 = arith.constant 0 : i32
    %c0_i32_1 = arith.constant 0 : i32
    return %c0_i32, %c0_i32_0 : i32, i32
  }
  func.func @transform_5(%arg0: i32) -> (i32, i32) {
    %c0_i32 = arith.constant 0 : i32
    %c0_i32_0 = arith.constant 0 : i32
    %c0_i32_1 = arith.constant 0 : i32
    return %c0_i32, %c0_i32_0 : i32, i32
  }
  func.func @transform_6(%arg0: i32) -> (i32, i32) {
    %c0_i32 = arith.constant 0 : i32
    %c0_i32_0 = arith.constant 0 : i32
    %c0_i32_1 = arith.constant 0 : i32
    return %c0_i32, %c0_i32_0 : i32, i32
  }
  func.func @transform_7(%arg0: i32) -> (i32, i32) {
    %c0_i32 = arith.constant 0 : i32
    %c0_i32_0 = arith.constant 0 : i32
    %c0_i32_1 = arith.constant 0 : i32
    return %c0_i32, %c0_i32_0 : i32, i32
  }
  func.func @transform_8(%arg0: i32) -> (i32, i32) {
    %c0_i32 = arith.constant 0 : i32
    %c0_i32_0 = arith.constant 0 : i32
    %c0_i32_1 = arith.constant 0 : i32
    return %c0_i32, %c0_i32_0 : i32, i32
  }
  func.func @transform_9(%arg0: i32) -> (i32, i32) {
    %c0_i32 = arith.constant 0 : i32
    %c0_i32_0 = arith.constant 0 : i32
    %c0_i32_1 = arith.constant 0 : i32
    return %c0_i32, %c0_i32_0 : i32, i32
  }
  func.func @transform_10(%arg0: i32) -> (i32, i32) {
    %c0_i32 = arith.constant 0 : i32
    %c0_i32_0 = arith.constant 0 : i32
    %c0_i32_1 = arith.constant 0 : i32
    return %c0_i32, %c0_i32_0 : i32, i32
  }
  func.func @transform_11(%arg0: i32) -> (i32, i32) {
    %c0_i32 = arith.constant 0 : i32
    %c0_i32_0 = arith.constant 0 : i32
    %c0_i32_1 = arith.constant 0 : i32
    return %c0_i32, %c0_i32_0 : i32, i32
  }
  func.func @transform_12(%arg0: i32) -> (i32, i32) {
    %c0_i32 = arith.constant 0 : i32
    %c0_i32_0 = arith.constant 0 : i32
    %c0_i32_1 = arith.constant 0 : i32
    return %c0_i32, %c0_i32_0 : i32, i32
  }
  func.func @transform_13(%arg0: i32) -> (i32, i32) {
    %c0_i32 = arith.constant 0 : i32
    %c0_i32_0 = arith.constant 0 : i32
    %c0_i32_1 = arith.constant 0 : i32
    return %c0_i32, %c0_i32_0 : i32, i32
  }
  func.func @transform_14(%arg0: i32) -> (i32, i32) {
    %c0_i32 = arith.constant 0 : i32
    %c0_i32_0 = arith.constant 0 : i32
    %c0_i32_1 = arith.constant 0 : i32
    return %c0_i32, %c0_i32_0 : i32, i32
  }
  func.func @transform_15(%arg0: i32) -> (i32, i32) {
    %c0_i32 = arith.constant 0 : i32
    %c0_i32_0 = arith.constant 0 : i32
    %c0_i32_1 = arith.constant 0 : i32
    return %c0_i32, %c0_i32_0 : i32, i32
  }
  func.func @transform_16(%arg0: i32) -> (i32, i32) {
    %c0_i32 = arith.constant 0 : i32
    %c0_i32_0 = arith.constant 0 : i32
    %c0_i32_1 = arith.constant 0 : i32
    return %c0_i32, %c0_i32_0 : i32, i32
  }
  func.func @transform_17(%arg0: i32) -> (i32, i32) {
    %c0_i32 = arith.constant 0 : i32
    %c0_i32_0 = arith.constant 0 : i32
    %c0_i32_1 = arith.constant 0 : i32
    return %c0_i32, %c0_i32_0 : i32, i32
  }
  func.func @transform_18(%arg0: i32) -> (i32, i32) {
    %c0_i32 = arith.constant 0 : i32
    %c0_i32_0 = arith.constant 0 : i32
    %c0_i32_1 = arith.constant 0 : i32
    return %c0_i32, %c0_i32_0 : i32, i32
  }
  func.func @transform_19(%arg0: i32) -> (i32, i32) {
    %c0_i32 = arith.constant 0 : i32
    %c0_i32_0 = arith.constant 0 : i32
    %c0_i32_1 = arith.constant 0 : i32
    return %c0_i32, %c0_i32_0 : i32, i32
  }
  func.func @transform_20(%arg0: i32) -> (i32, i32) {
    %c0_i32 = arith.constant 0 : i32
    %c0_i32_0 = arith.constant 0 : i32
    %c0_i32_1 = arith.constant 0 : i32
    return %c0_i32, %c0_i32_0 : i32, i32
  }
  func.func @transform_21(%arg0: i32) -> (i32, i32) {
    %c0_i32 = arith.constant 0 : i32
    %c0_i32_0 = arith.constant 0 : i32
    %c0_i32_1 = arith.constant 0 : i32
    return %c0_i32, %c0_i32_0 : i32, i32
  }
  func.func @transform_22(%arg0: i32) -> (i32, i32) {
    %c0_i32 = arith.constant 0 : i32
    %c0_i32_0 = arith.constant 0 : i32
    %c0_i32_1 = arith.constant 0 : i32
    return %c0_i32, %c0_i32_0 : i32, i32
  }
  func.func @transform_23(%arg0: i32) -> (i32, i32) {
    %c0_i32 = arith.constant 0 : i32
    %c0_i32_0 = arith.constant 0 : i32
    %c0_i32_1 = arith.constant 0 : i32
    return %c0_i32, %c0_i32_0 : i32, i32
  }
  func.func @transform_24(%arg0: i32) -> (i32, i32) {
    %c0_i32 = arith.constant 0 : i32
    %c0_i32_0 = arith.constant 0 : i32
    %c0_i32_1 = arith.constant 0 : i32
    return %c0_i32, %c0_i32_0 : i32, i32
  }
  func.func @transform_25(%arg0: i32) -> (i32, i32) {
    %c0_i32 = arith.constant 0 : i32
    %c0_i32_0 = arith.constant 0 : i32
    %c0_i32_1 = arith.constant 0 : i32
    return %c0_i32, %c0_i32_0 : i32, i32
  }
  func.func @transform_26(%arg0: i32) -> (i32, i32) {
    %c0_i32 = arith.constant 0 : i32
    %c0_i32_0 = arith.constant 0 : i32
    %c0_i32_1 = arith.constant 0 : i32
    return %c0_i32, %c0_i32_0 : i32, i32
  }
  func.func @transform_27(%arg0: i32) -> (i32, i32) {
    %c0_i32 = arith.constant 0 : i32
    %c0_i32_0 = arith.constant 0 : i32
    %c0_i32_1 = arith.constant 0 : i32
    return %c0_i32, %c0_i32_0 : i32, i32
  }
  func.func @transform_28(%arg0: i32) -> (i32, i32) {
    %c0_i32 = arith.constant 0 : i32
    %c0_i32_0 = arith.constant 0 : i32
    %c0_i32_1 = arith.constant 0 : i32
    return %c0_i32, %c0_i32_0 : i32, i32
  }
  func.func @transform_29(%arg0: i32) -> (i32, i32) {
    %c0_i32 = arith.constant 0 : i32
    %c0_i32_0 = arith.constant 0 : i32
    %c0_i32_1 = arith.constant 0 : i32
    return %c0_i32, %c0_i32_0 : i32, i32
  }
  func.func @transform_30(%arg0: i32) -> (i32, i32) {
    %c0_i32 = arith.constant 0 : i32
    %c0_i32_0 = arith.constant 0 : i32
    %c0_i32_1 = arith.constant 0 : i32
    return %c0_i32, %c0_i32_0 : i32, i32
  }
  func.func @transform_31(%arg0: i32) -> (i32, i32) {
    %c0_i32 = arith.constant 0 : i32
    %c0_i32_0 = arith.constant 0 : i32
    %c0_i32_1 = arith.constant 0 : i32
    return %c0_i32, %c0_i32_0 : i32, i32
  }
  func.func @transform_32(%arg0: i32) -> (i32, i32) {
    %c0_i32 = arith.constant 0 : i32
    %c0_i32_0 = arith.constant 0 : i32
    %c0_i32_1 = arith.constant 0 : i32
    return %c0_i32, %c0_i32_0 : i32, i32
  }
  func.func @transform_33(%arg0: i32) -> (i32, i32) {
    %c0_i32 = arith.constant 0 : i32
    %c0_i32_0 = arith.constant 0 : i32
    %c0_i32_1 = arith.constant 0 : i32
    return %c0_i32, %c0_i32_0 : i32, i32
  }
  func.func @transform_34(%arg0: i32) -> (i32, i32) {
    %c0_i32 = arith.constant 0 : i32
    %c0_i32_0 = arith.constant 0 : i32
    %c0_i32_1 = arith.constant 0 : i32
    return %c0_i32, %c0_i32_0 : i32, i32
  }
  func.func @transform_35(%arg0: i32) -> (i32, i32) {
    %c0_i32 = arith.constant 0 : i32
    %c0_i32_0 = arith.constant 0 : i32
    %c0_i32_1 = arith.constant 0 : i32
    return %c0_i32, %c0_i32_0 : i32, i32
  }
  func.func @transform_36(%arg0: i32) -> (i32, i32) {
    %c0_i32 = arith.constant 0 : i32
    %c0_i32_0 = arith.constant 0 : i32
    %c0_i32_1 = arith.constant 0 : i32
    return %c0_i32, %c0_i32_0 : i32, i32
  }
  func.func @transform_37(%arg0: i32) -> (i32, i32) {
    %c0_i32 = arith.constant 0 : i32
    %c0_i32_0 = arith.constant 0 : i32
    %c0_i32_1 = arith.constant 0 : i32
    return %c0_i32, %c0_i32_0 : i32, i32
  }
}

</mosaic_0001>

<bundles_post_ra>
// kernel: eq.1
= control target key start
LH: loop header
LB: loop body
LE: loop exit
PB: predicated region body
PF: predicated region fallthrough
CT: control target
= control target key end

     0   :  { %s69_s10 = smov 56   ;;  %s70_s11 = smov 40   ;;  %vm3_vm0 = vcmask 64512   ;;  %vm9_vm1 = vcmask 523712   ;;  %vm15_vm2 = vcmask 458112   ;;  %vm21_vm3 = vcmask 392512   ;;  %s113_s0 = inlined_call_operand.vmem [shape: s32[8,8], index: 0, kind: input, shape index: {}]   ;;  %s114_s1 = inlined_call_operand.vmem [shape: s32[64], index: 1, kind: output, shape index: {}]  }
   0x1   :  { %v55_v0 = vld [vmem:[%s113_s0 + $0x7] sm:$0x1]   ;;  %v57_v1 = vld [vmem:[%s113_s0 + $0x5] sm:$0x1]   ;;  %v56_v2 = vld [vmem:[%s113_s0 + $0x6] sm:$0x1]  }
   0x2   :  { %7 = vrot.lane.b32.xlu0 %v55_v0, %s69_s10  ;;  %19 = vrot.lane.b32.xlu1 %v57_v1, %s70_s11  ;;  %v58_v3 = vld [vmem:[%s113_s0 + $0x4] sm:$0x1]   ;;  %v2_v4 = vld [vmem:[%s113_s0] sm:$0x1]   ;;  %s71_s18 = smov 48   ;;  %s72_s19 = smov 32  }
   0x3   :  { %4 = vst.msk [vmem:[#allocation0] sm:$0x1] %vm3_vm0, %v2_v4   ;;  %v59_v5 = vld [vmem:[%s113_s0 + $0x3] sm:$0x1]   ;;  %v60_v6 = vld [vmem:[%s113_s0 + $0x2] sm:$0x1]  }
   0x4   :  { %s73_s24 = smov 24   ;;  %s74_s25 = smov 16   ;;  %v61_v7 = vld [vmem:[%s113_s0 + $0x1] sm:$0x1]   ;;  %vm27_vm4 = vcmask 326912   ;;  %vm33_vm5 = vcmask 261312  }
   0x5   :  { %s75_s0 = smov 8   ;;  %vm39_vm6 = vcmask 195712   ;;  %vm45_vm7 = vcmask 130112  }
   0x6   :  { %13 = vrot.lane.b32.xlu0 %v56_v2, %s71_s18  ;;  %25 = vrot.lane.b32.xlu1 %v58_v3, %s72_s19 }
   0xa   :  { %31 = vrot.lane.b32.xlu0 %v59_v5, %s73_s24  ;;  %37 = vrot.lane.b32.xlu1 %v60_v6, %s74_s25 }
   0xe   :  { %43 = vrot.lane.b32.xlu0 %v61_v7, %s75_s0 }
  0x74   :  { %v8_v8 = vpop.permute.xlu0 %7   ;;  %v20_v9 = vpop.permute.xlu1 %19  }
  0x75   :  { %10 = vst.msk [vmem:[#allocation0] sm:$0x1] %vm9_vm1, %v8_v8  }
  0x78   :  { %v14_v10 = vpop.permute.xlu0 %13   ;;  %v26_v11 = vpop.permute.xlu1 %25  }
  0x79   :  { %16 = vst.msk [vmem:[#allocation0] sm:$0x1] %vm15_vm2, %v14_v10  }
  0x7a   :  { %22 = vst.msk [vmem:[#allocation0] sm:$0x1] %vm21_vm3, %v20_v9  }
  0x7b   :  { %28 = vst.msk [vmem:[#allocation0] sm:$0x1] %vm27_vm4, %v26_v11  }
  0x7c   :  { %v32_v12 = vpop.permute.xlu0 %31   ;;  %v38_v13 = vpop.permute.xlu1 %37  }
  0x7d   :  { %34 = vst.msk [vmem:[#allocation0] sm:$0x1] %vm33_vm5, %v32_v12  }
  0x7e   :  { %40 = vst.msk [vmem:[#allocation0] sm:$0x1] %vm39_vm6, %v38_v13  }
  0x80   :  { %v44_v14 = vpop.permute.xlu0 %43  }
  0x81   :  { %46 = vst.msk [vmem:[#allocation0] sm:$0x1] %vm45_vm7, %v44_v14  }
  0x88   :  { %v51_v15 = vld [vmem:[#allocation0] sm:$0x1] }
  0x89   :  { %54 = vst [vmem:[%s114_s1] sm:$0x1] %v51_v15 }

// kernel: mul.18
= control target key start
LH: loop header
LB: loop body
LE: loop exit
PB: predicated region body
PF: predicated region fallthrough
CT: control target
= control target key end

     0   :  { %s69_s10 = smov 56   ;;  %s70_s11 = smov 40   ;;  %vm3_vm0 = vcmask 64512   ;;  %vm9_vm1 = vcmask 523712   ;;  %vm15_vm2 = vcmask 458112   ;;  %vm21_vm3 = vcmask 392512   ;;  %s113_s0 = inlined_call_operand.vmem [shape: f32[8,8], index: 0, kind: input, shape index: {}]   ;;  %s114_s1 = inlined_call_operand.vmem [shape: f32[64], index: 1, kind: output, shape index: {}]  }
   0x1   :  { %v55_v0 = vld [vmem:[%s113_s0 + $0x7] sm:$0x1]   ;;  %v57_v1 = vld [vmem:[%s113_s0 + $0x5] sm:$0x1]   ;;  %v56_v2 = vld [vmem:[%s113_s0 + $0x6] sm:$0x1]  }
   0x2   :  { %7 = vrot.lane.b32.xlu0 %v55_v0, %s69_s10  ;;  %19 = vrot.lane.b32.xlu1 %v57_v1, %s70_s11  ;;  %v58_v3 = vld [vmem:[%s113_s0 + $0x4] sm:$0x1]   ;;  %v2_v4 = vld [vmem:[%s113_s0] sm:$0x1]   ;;  %s71_s18 = smov 48   ;;  %s72_s19 = smov 32  }
   0x3   :  { %4 = vst.msk [vmem:[#allocation0] sm:$0x1] %vm3_vm0, %v2_v4   ;;  %v59_v5 = vld [vmem:[%s113_s0 + $0x3] sm:$0x1]   ;;  %v60_v6 = vld [vmem:[%s113_s0 + $0x2] sm:$0x1]  }
   0x4   :  { %s73_s24 = smov 24   ;;  %s74_s25 = smov 16   ;;  %v61_v7 = vld [vmem:[%s113_s0 + $0x1] sm:$0x1]   ;;  %vm27_vm4 = vcmask 326912   ;;  %vm33_vm5 = vcmask 261312  }
   0x5   :  { %s75_s0 = smov 8   ;;  %vm39_vm6 = vcmask 195712   ;;  %vm45_vm7 = vcmask 130112  }
   0x6   :  { %13 = vrot.lane.b32.xlu0 %v56_v2, %s71_s18  ;;  %25 = vrot.lane.b32.xlu1 %v58_v3, %s72_s19 }
   0xa   :  { %31 = vrot.lane.b32.xlu0 %v59_v5, %s73_s24  ;;  %37 = vrot.lane.b32.xlu1 %v60_v6, %s74_s25 }
   0xe   :  { %43 = vrot.lane.b32.xlu0 %v61_v7, %s75_s0 }
  0x74   :  { %v8_v8 = vpop.permute.xlu0 %7   ;;  %v20_v9 = vpop.permute.xlu1 %19  }
  0x75   :  { %10 = vst.msk [vmem:[#allocation0] sm:$0x1] %vm9_vm1, %v8_v8  }
  0x78   :  { %v14_v10 = vpop.permute.xlu0 %13   ;;  %v26_v11 = vpop.permute.xlu1 %25  }
  0x79   :  { %16 = vst.msk [vmem:[#allocation0] sm:$0x1] %vm15_vm2, %v14_v10  }
  0x7a   :  { %22 = vst.msk [vmem:[#allocation0] sm:$0x1] %vm21_vm3, %v20_v9  }
  0x7b   :  { %28 = vst.msk [vmem:[#allocation0] sm:$0x1] %vm27_vm4, %v26_v11  }
  0x7c   :  { %v32_v12 = vpop.permute.xlu0 %31   ;;  %v38_v13 = vpop.permute.xlu1 %37  }
  0x7d   :  { %34 = vst.msk [vmem:[#allocation0] sm:$0x1] %vm33_vm5, %v32_v12  }
  0x7e   :  { %40 = vst.msk [vmem:[#allocation0] sm:$0x1] %vm39_vm6, %v38_v13  }
  0x80   :  { %v44_v14 = vpop.permute.xlu0 %43  }
  0x81   :  { %46 = vst.msk [vmem:[#allocation0] sm:$0x1] %vm45_vm7, %v44_v14  }
  0x88   :  { %v51_v15 = vld [vmem:[#allocation0] sm:$0x1] }
  0x89   :  { %54 = vst [vmem:[%s114_s1] sm:$0x1] %v51_v15 }

// kernel: tile.9
= control target key start
LH: loop header
LB: loop body
LE: loop exit
PB: predicated region body
PF: predicated region fallthrough
CT: control target
= control target key end

     0   :  { %vm163_vm0 = vcmask 1047556   ;;  %s399_s10 = smov 96   ;;  %vm165_vm1 = vcmask 261120   ;;  %s401_s21 = smov 32   ;;  %vm202_vm2 = vcmask 1048320   ;;  %vm245_vm3 = vcmask 785920   ;;  %s580_s0 = inlined_call_operand.vmem [shape: f32[32,4,32], index: 0, kind: input, shape index: {}]   ;;  %s581_s1 = inlined_call_operand.vmem [shape: f32[32,128], index: 1, kind: output, shape index: {}]  }
   0x1   :  { %v377_v0 = vld [vmem:[%s580_s0 + $0x1c] sm:$0xf]  ;;  %v378_v1 = vld [vmem:[%s580_s0 + $0x18] sm:$0xf]  ;;  %v379_v2 = vld [vmem:[%s580_s0 + $0x14] sm:$0xf] }
   0x2   :  { %129 = vst [vmem:[#allocation0 + $0x38] sm:$0xf] %v377_v0  ;;  %134 = vst [vmem:[#allocation0 + $0x30] sm:$0xf] %v378_v1  ;;  %v380_v3 = vld [vmem:[%s580_s0 + $0x10] sm:$0xf] }
   0x3   :  { %139 = vst [vmem:[#allocation0 + $0x28] sm:$0xf] %v379_v2  ;;  %v381_v4 = vld [vmem:[%s580_s0 + $0xc] sm:$0xf]  ;;  %v382_v5 = vld [vmem:[%s580_s0 + $0x8] sm:$0xf] }
   0x4   :  { %144 = vst [vmem:[#allocation0 + $0x20] sm:$0xf] %v380_v3  ;;  %149 = vst [vmem:[#allocation0 + $0x18] sm:$0xf] %v381_v4  ;;  %v383_v6 = vld [vmem:[%s580_s0 + $0x4] sm:$0xf] }
   0x5   :  { %154 = vst [vmem:[#allocation0 + $0x10] sm:$0xf] %v382_v5  ;;  %v159_v7 = vld [vmem:[%s580_s0] sm:$0xf]  ;;  %158 = vst [vmem:[#allocation0 + $0x8] sm:$0xf] %v383_v6 }
   0x6   :  { %160 = vst [vmem:[#allocation0] sm:$0xf] %v159_v7  ;;  %v361_v8 = vld [vmem:[%s580_s0 + $0x5c] sm:$0xf]  ;;  %v362_v9 = vld [vmem:[%s580_s0 + $0x58] sm:$0xf] }
   0x7   :  { %v363_v10 = vld [vmem:[%s580_s0 + $0x54] sm:$0xf]  ;;  %49 = vst [vmem:[#allocation0 + $0xb8] sm:$0xf] %v361_v8  ;;  %54 = vst [vmem:[#allocation0 + $0xb0] sm:$0xf] %v362_v9 }
   0x8   :  { %59 = vst [vmem:[#allocation0 + $0xa8] sm:$0xf] %v363_v10  ;;  %v364_v11 = vld [vmem:[%s580_s0 + $0x50] sm:$0xf]  ;;  %v365_v12 = vld [vmem:[%s580_s0 + $0x4c] sm:$0xf] }
   0x9   :  { %v366_v13 = vld [vmem:[%s580_s0 + $0x48] sm:$0xf]  ;;  %64 = vst [vmem:[#allocation0 + $0xa0] sm:$0xf] %v364_v11  ;;  %69 = vst [vmem:[#allocation0 + $0x98] sm:$0xf] %v365_v12 }
   0xa   :  { %74 = vst [vmem:[#allocation0 + $0x90] sm:$0xf] %v366_v13  ;;  %v367_v14 = vld [vmem:[%s580_s0 + $0x44] sm:$0xf]  ;;  %v368_v15 = vld [vmem:[%s580_s0 + $0x40] sm:$0xf] }
   0xb   :  { %v369_v16 = vld [vmem:[%s580_s0 + $0x3c] sm:$0xf]  ;;  %79 = vst [vmem:[#allocation0 + $0x88] sm:$0xf] %v367_v14  ;;  %84 = vst [vmem:[#allocation0 + $0x80] sm:$0xf] %v368_v15 }
   0xc   :  { %89 = vst [vmem:[#allocation0 + $0x78] sm:$0xf] %v369_v16  ;;  %v370_v17 = vld [vmem:[%s580_s0 + $0x38] sm:$0xf]  ;;  %v371_v18 = vld [vmem:[%s580_s0 + $0x34] sm:$0xf] }
   0xd   :  { %v372_v19 = vld [vmem:[%s580_s0 + $0x30] sm:$0xf]  ;;  %94 = vst [vmem:[#allocation0 + $0x70] sm:$0xf] %v370_v17  ;;  %99 = vst [vmem:[#allocation0 + $0x68] sm:$0xf] %v371_v18 }
   0xe   :  { %104 = vst [vmem:[#allocation0 + $0x60] sm:$0xf] %v372_v19  ;;  %v373_v20 = vld [vmem:[%s580_s0 + $0x2c] sm:$0xf]  ;;  %v374_v21 = vld [vmem:[%s580_s0 + $0x28] sm:$0xf] }
   0xf   :  { %v375_v22 = vld [vmem:[%s580_s0 + $0x24] sm:$0xf]  ;;  %109 = vst [vmem:[#allocation0 + $0x58] sm:$0xf] %v373_v20  ;;  %114 = vst [vmem:[#allocation0 + $0x50] sm:$0xf] %v374_v21 }
  0x10   :  { %119 = vst [vmem:[#allocation0 + $0x48] sm:$0xf] %v375_v22  ;;  %v376_v23 = vld [vmem:[%s580_s0 + $0x20] sm:$0xf]  ;;  %v353_v24 = vld [vmem:[%s580_s0 + $0x7c] sm:$0xf] }
  0x11   :  { %v354_v25 = vld [vmem:[%s580_s0 + $0x78] sm:$0xf]  ;;  %124 = vst [vmem:[#allocation0 + $0x40] sm:$0xf] %v376_v23  ;;  %9 = vst [vmem:[#allocation0 + $0xf8] sm:$0xf] %v353_v24 }
  0x12   :  { %v197_v26 = vld [vmem:[#allocation0 + $0x3] ss:$8 sm:$0xf0]   ;;  %14 = vst [vmem:[#allocation0 + $0xf0] sm:$0xf] %v354_v25  ;;  %vm288_vm4 = vcmask 523520  }
  0x13   :  { %v355_v27 = vld [vmem:[%s580_s0 + $0x74] sm:$0xf]  ;;  %v195_v28 = vld [vmem:[#allocation0 + $0x3] ss:$8 sm:$0xf]  }
  0x14   :  { %19 = vst [vmem:[#allocation0 + $0xe8] sm:$0xf] %v355_v27  ;;  %v356_v29 = vld [vmem:[%s580_s0 + $0x70] sm:$0xf]  ;;  %v199_v30 = vsel %vm163_vm0, %v197_v26, %v195_v28  ;;  %v357_v31 = vld [vmem:[%s580_s0 + $0x6c] sm:$0xf] }
  0x15   :  { %24 = vst [vmem:[#allocation0 + $0xe0] sm:$0xf] %v356_v29  ;;  %v358_v32 = vld [vmem:[%s580_s0 + $0x68] sm:$0xf]  ;;  %v359_v33 = vld [vmem:[%s580_s0 + $0x64] sm:$0xf]  ;;  %200 = vrot.lane.b32.xlu0 %v199_v30, %s399_s10 }
  0x16   :  { %v218_v34 = vld [vmem:[#allocation0 + $0x83] ss:$8 sm:$0xf0]   ;;  %29 = vst [vmem:[#allocation0 + $0xd8] sm:$0xf] %v357_v31 }
  0x17   :  { %34 = vst [vmem:[#allocation0 + $0xd0] sm:$0xf] %v358_v32  ;;  %39 = vst [vmem:[#allocation0 + $0xc8] sm:$0xf] %v359_v33  ;;  %v360_v35 = vld [vmem:[%s580_s0 + $0x60] sm:$0xf] }
  0x18   :  { %v216_v36 = vld [vmem:[#allocation0 + $0x83] ss:$8 sm:$0xf]   ;;  %44 = vst [vmem:[#allocation0 + $0xc0] sm:$0xf] %v360_v35  ;;  %s400_s0 = smov 64  }
  0x19   :  { %v220_v37 = vsel %vm163_vm0, %v218_v34, %v216_v36  ;;  %v207_v38 = vld [vmem:[#allocation0 + $0x43] ss:$8 sm:$0xf0]   ;;  %v238_v39 = vld [vmem:[#allocation0 + $0x2] ss:$8 sm:$0xf]  }
  0x1a   :  { %221 = vrot.lane.b32.xlu1 %v220_v37, %s399_s10  ;;  %v205_v40 = vld [vmem:[#allocation0 + $0x43] ss:$8 sm:$0xf]   ;;  %v240_v41 = vld [vmem:[#allocation0 + $0x2] ss:$8 sm:$0xf0]  }
  0x1b   :  { %v209_v42 = vsel %vm163_vm0, %v207_v38, %v205_v40  ;;  %v250_v44 = vld [vmem:[#allocation0 + $0x42] ss:$8 sm:$0xf0]   ;;  %v242_v45 = vsel %vm163_vm0, %v240_v41, %v238_v39  ;;  %v281_v52 = vld [vmem:[#allocation0 + $0x1] ss:$8 sm:$0xf]  }
  0x1c   :  { %210 = vrot.lane.b32.xlu0 %v209_v42, %s399_s10  ;;  %v229_v43 = vld [vmem:[#allocation0 + $0xc3] ss:$8 sm:$0xf0]   ;;  %v248_v46 = vld [vmem:[#allocation0 + $0x42] ss:$8 sm:$0xf]  }
  0x1d   :  { %v259_v47 = vld [vmem:[#allocation0 + $0x82] ss:$8 sm:$0xf]   ;;  %v252_v53 = vsel %vm163_vm0, %v250_v44, %v248_v46  ;;  %v283_v55 = vld [vmem:[#allocation0 + $0x1] ss:$8 sm:$0xf0]  }
  0x1e   :  { %v261_v49 = vld [vmem:[#allocation0 + $0x82] ss:$8 sm:$0xf0]   ;;  %v161_v56 = vld [vmem:[#allocation0] ss:$8 sm:$0xf]   ;;  %v285_v4 = vsel %vm163_vm0, %v283_v55, %v281_v52 }
  0x1f   :  { %v227_v48 = vld [vmem:[#allocation0 + $0xc3] ss:$8 sm:$0xf]   ;;  %v272_v51 = vld [vmem:[#allocation0 + $0xc2] ss:$8 sm:$0xf0]   ;;  %v263_v54 = vsel %vm163_vm0, %v261_v49, %v259_v47 }
  0x20   :  { %v231_v50 = vsel %vm163_vm0, %v229_v43, %v227_v48  ;;  %243 = vrot.lane.b32.xlu0 %v242_v45, %s400_s0  ;;  %v270_v57 = vld [vmem:[#allocation0 + $0xc2] ss:$8 sm:$0xf]   ;;  %v162_v58 = vld [vmem:[#allocation0] ss:$8 sm:$0xf0]  }
  0x21   :  { %232 = vrot.lane.b32.xlu1 %v231_v50, %s399_s10  ;;  %v164_v59 = vsel %vm163_vm0, %v162_v58, %v161_v56  ;;  %v177_v60 = vld [vmem:[#allocation0 + $0x80] ss:$8 sm:$0xf]   ;;  %v291_v62 = vld [vmem:[#allocation0 + $0x41] ss:$8 sm:$0xf]   ;;  %v274_v3 = vsel %vm163_vm0, %v272_v51, %v270_v57 }
  0x22   :  { %v179_v61 = vld [vmem:[#allocation0 + $0x80] ss:$8 sm:$0xf0]   ;;  %v293_v63 = vld [vmem:[#allocation0 + $0x41] ss:$8 sm:$0xf0]  }
  0x23   :  { %166 = vst.msk [vmem:[%s581_s1] sm:$0xff] %vm165_vm1, %v164_v59   ;;  %v181_v0 = vsel %vm163_vm0, %v179_v61, %v177_v60  ;;  %v168_v1 = vld [vmem:[#allocation0 + $0x40] ss:$8 sm:$0xf]   ;;  %v295_v11 = vsel %vm163_vm0, %v293_v63, %v291_v62 }
  0x24   :  { %264 = vrot.lane.b32.xlu0 %v263_v54, %s400_s0  ;;  %v170_v2 = vld [vmem:[#allocation0 + $0x40] ss:$8 sm:$0xf0]   ;;  %385 = vst.msk [vmem:[%s581_s1 + $0x10] sm:$0xff] %vm165_vm1, %v181_v0  }
  0x25   :  { %253 = vrot.lane.b32.xlu1 %v252_v53, %s400_s0  ;;  %v172_v5 = vsel %vm163_vm0, %v170_v2, %v168_v1  ;;  %v186_v6 = vld [vmem:[#allocation0 + $0xc0] ss:$8 sm:$0xf]   ;;  %v302_v8 = vld [vmem:[#allocation0 + $0x81] ss:$8 sm:$0xf]  }
  0x26   :  { %v188_v7 = vld [vmem:[#allocation0 + $0xc0] ss:$8 sm:$0xf0]   ;;  %v304_v9 = vld [vmem:[#allocation0 + $0x81] ss:$8 sm:$0xf0]  }
  0x27   :  { %384 = vst.msk [vmem:[%s581_s1 + $0x8] sm:$0xff] %vm165_vm1, %v172_v5   ;;  %v190_v10 = vsel %vm163_vm0, %v188_v7, %v186_v6  ;;  %v306_v12 = vsel %vm163_vm0, %v304_v9, %v302_v8  ;;  %v313_v13 = vld [vmem:[#allocation0 + $0xc1] ss:$8 sm:$0xf]  }
  0x28   :  { %386 = vst.msk [vmem:[%s581_s1 + $0x18] sm:$0xff] %vm165_vm1, %v190_v10   ;;  %286 = vrot.lane.b32.xlu0 %v285_v4, %s401_s21  ;;  %v315_v14 = vld [vmem:[#allocation0 + $0xc1] ss:$8 sm:$0xf0]  }
  0x29   :  { %275 = vrot.lane.b32.xlu1 %v274_v3, %s400_s0  ;;  %v317_v15 = vsel %vm163_vm0, %v315_v14, %v313_v13 }
  0x2c   :  { %307 = vrot.lane.b32.xlu0 %v306_v12, %s401_s21 }
  0x2d   :  { %296 = vrot.lane.b32.xlu1 %v295_v11, %s401_s21 }
  0x31   :  { %318 = vrot.lane.b32.xlu1 %v317_v15, %s401_s21 }
  0x87   :  { %v201_v16 = vpop.permute.xlu0 %200  }
  0x88   :  { %203 = vst.msk [vmem:[%s581_s1] sm:$0xff] %vm202_vm2, %v201_v16  }
  0x8c   :  { %v222_v17 = vpop.permute.xlu1 %221  }
  0x8d   :  { %388 = vst.msk [vmem:[%s581_s1 + $0x10] sm:$0xff] %vm202_vm2, %v222_v17  }
  0x8e   :  { %v211_v18 = vpop.permute.xlu0 %210  }
  0x8f   :  { %387 = vst.msk [vmem:[%s581_s1 + $0x8] sm:$0xff] %vm202_vm2, %v211_v18  }
  0x92   :  { %v244_v20 = vpop.permute.xlu0 %243  }
  0x93   :  { %v233_v19 = vpop.permute.xlu1 %232   ;;  %246 = vst.msk [vmem:[%s581_s1] sm:$0xff] %vm245_vm3, %v244_v20  }
  0x94   :  { %389 = vst.msk [vmem:[%s581_s1 + $0x18] sm:$0xff] %vm202_vm2, %v233_v19  }
  0x96   :  { %v265_v22 = vpop.permute.xlu0 %264  }
  0x97   :  { %v254_v21 = vpop.permute.xlu1 %253   ;;  %391 = vst.msk [vmem:[%s581_s1 + $0x10] sm:$0xff] %vm245_vm3, %v265_v22  }
  0x98   :  { %390 = vst.msk [vmem:[%s581_s1 + $0x8] sm:$0xff] %vm245_vm3, %v254_v21  }
  0x9a   :  { %v287_v24 = vpop.permute.xlu0 %286  }
  0x9b   :  { %v276_v23 = vpop.permute.xlu1 %275   ;;  %289 = vst.msk [vmem:[%s581_s1] sm:$0xff] %vm288_vm4, %v287_v24  }
  0x9c   :  { %392 = vst.msk [vmem:[%s581_s1 + $0x18] sm:$0xff] %vm245_vm3, %v276_v23  }
  0x9e   :  { %v308_v26 = vpop.permute.xlu0 %307  }
  0x9f   :  { %v297_v25 = vpop.permute.xlu1 %296   ;;  %394 = vst.msk [vmem:[%s581_s1 + $0x10] sm:$0xff] %vm288_vm4, %v308_v26  }
  0xa0   :  { %393 = vst.msk [vmem:[%s581_s1 + $0x8] sm:$0xff] %vm288_vm4, %v297_v25  }
  0xa3   :  { %v319_v27 = vpop.permute.xlu1 %318  }
  0xa4   :  { %395 = vst.msk [vmem:[%s581_s1 + $0x18] sm:$0xff] %vm288_vm4, %v319_v27  }

// kernel: gat_transformer_forward.1
= control target key start
LH: loop header
LB: loop body
LE: loop exit
PB: predicated region body
PF: predicated region fallthrough
CT: control target
= control target key end

     0   :  { %v2599_v0 = vmov 0.0   ;;  %vm2600_vm0 = vmmov 0   ;;  %v2601_v1 = vmov 0   ;;  %vm177_vm1 = vcmask 1042432   ;;  %s2602_s6 = smov 1   ;;  %s2603_s10 = smov 2   ;;  %s2932_s0 = inlined_call_operand.smem [shape: u32[38], index: -1, kind: input, shape index: {}] }
   0x1   :  { %s2647_s5 = sld [smem:[%s2932_s0]]   ;;  %2327 = vmatprep.subr.mxu1 %v2599_v0  ;;  %251 = vmatprep.mubr.f32.mxu0 %v2599_v0  ;;  %vm173_vm2 = vcmask 220160   ;;  %s2604_s14 = smov 3   ;;  %vm565_vm3 = vcmask 130048   ;;  %vm737_vm4 = vcmask 523264   ;;  %vm482_vm5 = vcmask 64512  }
   0x2   :  { %2335 = vmatprep.mubr.msk.f32.mxu1 %vm2600_vm0, %v2599_v0  ;;  %2588 = vset.pattern.permute.xlu0 %v2601_v1  ;;  %s2115_s9 = sld [smem:[%s2932_s0 + %s2602_s6]]   ;;  %s2605_s18 = smov 4   ;;  %vm822_vm6 = vcmask 1041408   ;;  %vm639_vm7 = vcmask 392192   ;;  %vm815_vm8 = vcmask 15360   ;;  %vm901_vm9 = vcmask 48128  }
   0x3   :  { %s2116_s13 = sld [smem:[%s2932_s0 + %s2603_s10]]   ;;  %s2606_s22 = smov 8   ;;  %vm908_vm10 = vcmask 1045504   ;;  %vm998_vm11 = vcmask 261120   ;;  %vm1082_vm12 = vcmask 97280   ;;  %vm1089_vm13 = vcmask 1043456  }
   0x4   :  { %s2117_s17 = sld [smem:[%s2932_s0 + %s2604_s14]]   ;;  %s2607_s26 = smov 6   ;;  %vm1174_vm14 = vcmask 253952   ;;  %vm1186_vm15 = vcmask 105472  }
   0x5   :  { %s2118_s21 = sld [smem:[%s2932_s0 + %s2605_s18]]   ;;  %s2608_s30 = smov 11  }
   0x6   :  { %s2122_s25 = sld [smem:[%s2932_s0 + %s2606_s22]]   ;;  %s2609_s4 = smov 10  }
   0x7   :  { %v165_v2 = vld [vmem:[%s2647_s5 + $0x50] sm:$0x7]  ;;  %v164_v3 = vld [vmem:[%s2647_s5 + $0x48] sm:$0x7]  ;;  %v162_v4 = vld [vmem:[%s2647_s5 + $0x38] sm:$0xff]  ;;  %s2120_s29 = sld [smem:[%s2932_s0 + %s2607_s26]]   ;;  %s2610_s8 = smov 7  }
   0x8   :  { %2152 = vmatprep.subr.msk.mxu0 %vm177_vm1, %v165_v2  ;;  %v166_v5 = vld [vmem:[%s2647_s5 + $0x58] sm:$0x7]  ;;  %v161_v6 = vld [vmem:[%s2647_s5 + $0x30] sm:$0xff]  ;;  %v159_v7 = vld [vmem:[%s2647_s5 + $0x20] sm:$0xff]  ;;  %s2699_s3 = sld [smem:[%s2932_s0 + %s2608_s30]]   ;;  %s2611_s12 = smov 12  }
   0x9   :  { %2153 = vmatpush1.msk.msra.mxu0 %vm177_vm1, %v164_v3  ;;  %2328 = vmatpush3.msk.msra.mxu1 %vm177_vm1, %v166_v5  ;;  %v163_v8 = vld [vmem:[%s2647_s5 + $0x40] sm:$0xff]  ;;  %v158_v9 = vld [vmem:[%s2647_s5 + $0x18] sm:$0xff]  ;;  %v160_v10 = vld [vmem:[%s2647_s5 + $0x28] sm:$0xff]  ;;  %s2124_s7 = sld [smem:[%s2932_s0 + %s2609_s4]]   ;;  %s2612_s16 = smov 5   ;;  %vm1171_vm1 = vcmask 257024  }
   0xa   :  { %213 = vmatprep.subr.mxu0 %v162_v4  ;;  %2329 = vmatprep.subr.mxu1 %v2599_v0  ;;  %v156_v11 = vld [vmem:[%s2647_s5 + $0x8] sm:$0xff]  ;;  %v155_v12 = vld [vmem:[%s2647_s5] sm:$0xff]  ;;  %v157_v13 = vld [vmem:[%s2647_s5 + $0x10] sm:$0xff]  ;;  %s2121_s11 = sld [smem:[%s2932_s0 + %s2610_s8]]   ;;  %s2613_s20 = smov 14  }
   0xb   :  { %214 = vmatpush1.msra.mxu0 %v161_v6  ;;  %2330 = vmatpush3.msra.mxu1 %v163_v8  ;;  %v154_v14 = vld [vmem:[%s2115_s9] sm:$0xff]  ;;  %v332_v16 = vld [vmem:[%s2117_s17 + $0x8] sm:$0x3f]  ;;  %v333_v27 = vld [vmem:[%s2117_s17 + $0x10] sm:$0x3f]  ;;  %s2126_s15 = sld [smem:[%s2932_s0 + %s2611_s12]]   ;;  %s2614_s24 = smov 13  }
   0xc   :  { %215 = vmatprep.subr.mxu0 %v159_v7  ;;  %2331 = vmatprep.subr.mxu1 %v2599_v0  ;;  %v167_v15 = vld [vmem:[%s2116_s13] sm:$0xff]  ;;  %v564_v31 = vld [vmem:[%s2122_s25 + $0x8] sm:$0xff]  ;;  %s2119_s19 = sld [smem:[%s2932_s0 + %s2612_s16]]   ;;  %s2615_s28 = smov 16  }
   0xd   :  { %216 = vmatpush1.msra.mxu0 %v158_v9  ;;  %2332 = vmatpush3.msra.mxu1 %v160_v10  ;;  %v331_v29 = vld [vmem:[%s2117_s17] sm:$0x3f]  ;;  %s2128_s23 = sld [smem:[%s2932_s0 + %s2613_s20]]   ;;  %s2616_s2 = smov 9  }
   0xe   :  { %217 = vmatprep.subr.mxu0 %v156_v11  ;;  %2333 = vmatprep.subr.mxu1 %v2599_v0  ;;  %v474_v30 = vld [vmem:[%s2118_s21] sm:$0xff]  ;;  %v729_v34 = vld [vmem:[%s2699_s3 + $0x38] sm:$0xff]  ;;  %v728_v35 = vld [vmem:[%s2699_s3 + $0x30] sm:$0xff]  ;;  %s2127_s27 = sld [smem:[%s2932_s0 + %s2614_s24]]   ;;  %s2617_s6 = smov 15  }
   0xf   :  { %218 = vmatpush1.msra.mxu0 %v155_v12  ;;  %2334 = vmatpush3.msra.mxu1 %v157_v13  ;;  %v563_v32 = vld [vmem:[%s2122_s25] sm:$0xff]  ;;  %v727_v36 = vld [vmem:[%s2699_s3 + $0x28] sm:$0xff]  ;;  %v725_v38 = vld [vmem:[%s2699_s3 + $0x18] sm:$0xff]  ;;  %s2130_s1 = sld [smem:[%s2932_s0 + %s2615_s28]]   ;;  %s2618_s10 = smov 17  }
  0x10   :  { %2154 = vmatmul.mubr.msk.f32.vlgmr.msra.gmra.mxu0 %vm173_vm2, %v154_v14  ;;  %2336 = vmatmul.mubr.msk.f32.vlgmr.msra.gmra.mxu1 %vm173_vm2, %v154_v14  ;;  %v562_v33 = vld [vmem:[%s2120_s29] sm:$0x3f]  ;;  %v724_v39 = vld [vmem:[%s2699_s3 + $0x10] sm:$0xff]  ;;  %v723_v40 = vld [vmem:[%s2699_s3 + $0x8] sm:$0xff]  ;;  %s2123_s5 = sld [smem:[%s2932_s0 + %s2616_s2]]   ;;  %s2619_s14 = smov 18   ;;  %vm1211_vm2 = vcmask 1044480  }
  0x11   :  { %170 = vperm.xlu0 %2588, %v167_v15   ;;  %2338 = vmatprep.subr.mxu1 %v2599_v0  ;;  %v726_v37 = vld [vmem:[%s2699_s3 + $0x20] sm:$0xff]  ;;  %v561_v47 = vld [vmem:[%s2121_s11 + $0x28] sm:$0xff]  ;;  %v559_v50 = vld [vmem:[%s2121_s11 + $0x18] sm:$0xff]  ;;  %s2129_s9 = sld [smem:[%s2932_s0 + %s2617_s6]]   ;;  %s2620_s18 = smov 19  }
  0x12   :  { %2340 = vmatprep.mubr.msk.f32.mxu1 %vm2600_vm0, %v2599_v0  ;;  %398 = vmatprep.mubr.f32.mxu0 %v332_v16  ;;  %v722_v41 = vld [vmem:[%s2699_s3] sm:$0xff]  ;;  %v558_v51 = vld [vmem:[%s2121_s11 + $0x10] sm:$0xff]  ;;  %v557_v52 = vld [vmem:[%s2121_s11 + $0x8] sm:$0xff]  ;;  %s2131_s13 = sld [smem:[%s2932_s0 + %s2618_s10]]   ;;  %s2621_s22 = smov 22  }
  0x13   :  { %v721_v42 = vld [vmem:[%s2124_s7] sm:$0x3]  ;;  %v814_v2 = vld [vmem:[%s2128_s23 + $0x8] sm:$0xf]  ;;  %s2769_s17 = sld [smem:[%s2932_s0 + %s2619_s14]]   ;;  %s2622_s26 = smov 20  }
  0x14   :  { %v560_v49 = vld [vmem:[%s2121_s11 + $0x20] sm:$0xff]  ;;  %v812_v10 = vld [vmem:[%s2127_s27 + $0x8] sm:$0xf]  ;;  %s2775_s21 = sld [smem:[%s2932_s0 + %s2620_s18]]   ;;  %s2623_s30 = smov 23  }
  0x15   :  { %v556_v53 = vld [vmem:[%s2121_s11] sm:$0xff]  ;;  %v990_v4 = vld [vmem:[%s2130_s1 + $0x18] sm:$0xff]  ;;  %v989_v11 = vld [vmem:[%s2130_s1 + $0x10] sm:$0xff]  ;;  %s2782_s25 = sld [smem:[%s2932_s0 + %s2621_s22]]   ;;  %s2624_s4 = smov 21  }
  0x16   :  { %v2162_v56 = vld [vmem:[%s2126_s15] ss:$0 sm:$0xff]  ;;  %v988_v12 = vld [vmem:[%s2130_s1 + $0x8] sm:$0xff]  ;;  %s2134_s29 = sld [smem:[%s2932_s0 + %s2622_s26]]   ;;  %s2625_s8 = smov 24  }
  0x17   :  { %v2157_v60 = vld [vmem:[%s2119_s19] ss:$0 sm:$0xff]  ;;  %s2137_s3 = sld [smem:[%s2932_s0 + %s2623_s30]]   ;;  %s2626_s12 = smov 25  }
  0x18   :  { %v813_v1 = vld [vmem:[%s2128_s23] sm:$0xff]  ;;  %s2135_s7 = sld [smem:[%s2932_s0 + %s2624_s4]]   ;;  %s2627_s16 = smov 28  }
  0x19   :  { %v811_v3 = vld [vmem:[%s2127_s27] sm:$0xff]  ;;  %s2138_s11 = sld [smem:[%s2932_s0 + %s2625_s8]]   ;;  %s2629_s24 = smov 27  }
  0x1a   :  { %v2161_v6 = vld [vmem:[%s2123_s5] ss:$0 sm:$0xff]  ;;  %s2139_s15 = sld [smem:[%s2932_s0 + %s2626_s12]]   ;;  %s2630_s28 = smov 30  }
  0x1b   :  { %v987_v13 = vld [vmem:[%s2130_s1] sm:$0xff]  ;;  %s2142_s20 = sld [smem:[%s2932_s0 + %s2627_s16]]   ;;  %s2631_s2 = smov 29  }
  0x1c   :  { %s2141_s27 = sld [smem:[%s2932_s0 + %s2629_s24]]   ;;  %s2632_s6 = smov 31  }
  0x1d   :  { %s2144_s1 = sld [smem:[%s2932_s0 + %s2630_s28]]   ;;  %s2633_s10 = smov 34  }
  0x1e   :  { %s2143_s5 = sld [smem:[%s2932_s0 + %s2631_s2]]   ;;  %s2634_s14 = smov 32  }
  0x1f   :  { %s2146_s18 = sld [smem:[%s2932_s0 + %s2634_s14]]   ;;  %s2635_s19 = smov 33  }
  0x20   :  { %s2636_s22 = smov 35   ;;  %s2637_s26 = smov 36  }
  0x21   :  { %s2638_s30 = smov 37  }
  0x8c   :  { %v171_v17 = vpop.permute.xlu0 %170 }
  0xd0   :  { %v253_v18 = vpop.f32.mrf.mxu0  ;;  %v324_v19 = vpop.f32.mrf.mxu1 }
  0xd1   :  { %v325_v20 = vadd.f32 %v324_v19, %v171_v17  ;;  %v254_v21 = vadd.f32 %v253_v18, %v171_v17 }
  0xd2   :  { %v255_v22 = vpop.f32.mrf.mxu0  ;;  %v2337_v23 = vpop.f32.mrf.mxu1 }
  0xd3   :  { %v330_v24 = vmax.f32 %v325_v20, 0.0  ;;  %v256_v25 = vadd.f32 %v255_v22, %v171_v17  ;;  %v328_v28 = vmax.f32 %v254_v21, 0.0  ;;  %v1080_v20 = vld [vmem:[%s2129_s9] sm:$0xff] }
  0xd4   :  { %v2170_v21 = vld [vmem:[%s2131_s13] ss:$0 sm:$0xff]  ;;  %s2148_s13 = sld [smem:[%s2932_s0 + %s2633_s10]]  }
  0xd5   :  { %v329_v26 = vmax.f32 %v256_v25, 0.0  ;;  %2339 = vmatpush3.xpose.msra.mxu1 %v330_v24 }
  0xd6   :  { %2348 = vmatprep.subr.mxu1 %v2599_v0 }
  0xd7   :  { %364 = vmatprep.subr.mxu0 %v329_v26  ;;  %v1081_v26 = vld [vmem:[%s2129_s9 + $0x8] sm:$0xf]  ;;  %s2145_s9 = sld [smem:[%s2932_s0 + %s2632_s6]]  }
  0xd8   :  { %365 = vmatpush1.xpose.msra.mxu0 %v328_v28  ;;  %2341 = vmatmul.mubr.f32.vlgmr.msra.gmra.mxu1 %v333_v27  ;;  %v1173_v27 = vld [vmem:[%s2769_s17] sm:$0x1] }
  0xd9   :  { %2343 = vmatprep.subr.mxu0 %v2599_v0  ;;  %2352 = vmatprep.mubr.msk.f32.mxu1 %vm2600_vm0, %v2599_v0  ;;  %1175 = vst.msk [vmem:[#allocation2 + $0xc] sm:$0x1] %vm1174_vm14, %v1173_v27  ;;  %v1178_v28 = vld [vmem:[%s2775_s21] sm:$0xff] }
  0xda   :  { %2349 = vmatpush3.msra.mxu1 %v564_v31 }
  0xdb   :  { %399 = vmatmul.mubr.f32.vlgmr.msra.gmra.mxu0 %v331_v29  ;;  %2350 = vmatprep.subr.mxu1 %v2599_v0 }
  0xdc   :  { %2345 = vmatprep.mubr.msk.f32.mxu0 %vm2600_vm0, %v2599_v0  ;;  %2344 = vmatpush3.msra.mxu0 %v474_v30 }
  0xdd   :  { %2355 = vmatprep.subr.mxu0 %v2599_v0  ;;  %2351 = vmatpush3.msra.mxu1 %v563_v32 }
  0xde   :  { %2370 = vmatprep.subr.mxu1 %v2599_v0  ;;  %2353 = vmatmul.mubr.msk.f32.vlgmr.msra.gmra.mxu1 %vm565_vm3, %v562_v33 }
  0xdf   :  { %2371 = vmatpush3.msra.mxu1 %v729_v34  ;;  %2386 = vmatprep.mubr.msk.f32.mxu1 %vm2600_vm0, %v2599_v0 }
  0xe0   :  { %2372 = vmatprep.subr.mxu1 %v2599_v0 }
  0xe1   :  { %2373 = vmatpush3.msra.mxu1 %v728_v35  ;;  %v1179_v35 = vld [vmem:[%s2775_s21 + $0x8] sm:$0xff] }
  0xe2   :  { %2374 = vmatprep.subr.mxu1 %v2599_v0 }
  0xe3   :  { %2375 = vmatpush3.msra.mxu1 %v727_v36  ;;  %v1436_v36 = vld [vmem:[%s2782_s25 + $0x18] sm:$0xff] }
  0xe4   :  { %2376 = vmatprep.subr.mxu1 %v2599_v0 }
  0xe5   :  { %2377 = vmatpush3.msra.mxu1 %v726_v37  ;;  %v1180_v37 = vld [vmem:[%s2775_s21 + $0x10] sm:$0xff] }
  0xe6   :  { %2378 = vmatprep.subr.mxu1 %v2599_v0 }
  0xe7   :  { %2379 = vmatpush3.msra.mxu1 %v725_v38  ;;  %v1435_v38 = vld [vmem:[%s2782_s25 + $0x10] sm:$0xff] }
  0xe8   :  { %2380 = vmatprep.subr.mxu1 %v2599_v0 }
  0xe9   :  { %2381 = vmatpush3.msra.mxu1 %v724_v39  ;;  %v1181_v39 = vld [vmem:[%s2775_s21 + $0x18] sm:$0xff] }
  0xea   :  { %2382 = vmatprep.subr.mxu1 %v2599_v0 }
  0xeb   :  { %2383 = vmatpush3.msra.mxu1 %v723_v40  ;;  %v1182_v40 = vld [vmem:[%s2775_s21 + $0x20] sm:$0xff] }
  0xec   :  { %2384 = vmatprep.subr.mxu1 %v2599_v0 }
  0xed   :  { %2385 = vmatpush3.msra.mxu1 %v722_v41  ;;  %v1183_v41 = vld [vmem:[%s2775_s21 + $0x28] sm:$0xff] }
  0xee   :  { %2387 = vmatmul.mubr.msk.f32.vlgmr.msra.gmra.mxu1 %vm737_vm4, %v721_v42  ;;  %2399 = vmatprep.subr.mxu1 %v990_v4  ;;  %v1184_v42 = vld [vmem:[%s2775_s21 + $0x30] sm:$0xff] }
  0xef   :  { %2400 = vmatpush3.msra.mxu1 %v990_v4 }
  0xf0   :  { %2401 = vmatprep.subr.mxu1 %v989_v11 }
  0xf1   :  { %2402 = vmatpush3.msra.mxu1 %v989_v11 }
  0xf2   :  { %2403 = vmatprep.subr.mxu1 %v988_v12 }
  0xf3   :  { %2404 = vmatpush3.msra.mxu1 %v988_v12 }
  0xf4   :  { %2405 = vmatprep.subr.mxu1 %v987_v13 }
  0xf5   :  { %2406 = vmatpush3.msra.mxu1 %v987_v13  ;;  %v1418_v13 = vld [vmem:[%s2135_s7] sm:$0xff] }
  0xf6   :  { %2433 = vmatprep.subr.mxu1 %v2599_v0 }
 0x198   :  { %v470_v43 = vpop.f32.mrf.mxu1 }
 0x19a   :  { %v2342_v44 = vpop.f32.mrf.mxu1 }
 0x19b   :  { %v400_v45 = vpop.f32.mrf.mxu0  ;;  %v1434_v44 = vld [vmem:[%s2782_s25 + $0x8] sm:$0xff] }
 0x19c   :  { %v471_v46 = vadd.f32 %v470_v43, %v400_v45  ;;  %v1185_v43 = vld [vmem:[%s2775_s21 + $0x38] sm:$0xff]  ;;  %v1433_v45 = vld [vmem:[%s2782_s25] sm:$0xff]  ;;  %s2147_s21 = sld [smem:[%s2932_s0 + %s2635_s19]]  }
 0x19d   :  { %v402_v48 = vpop.f32.mrf.mxu0  ;;  %s2149_s25 = sld [smem:[%s2932_s0 + %s2636_s22]]  }
 0x19e   :  { %2346 = vmatmul.mubr.msk.f32.vlgmr.msra.gmra.mxu0 %vm482_vm5, %v471_v46  ;;  %v635_v54 = vpop.f32.mrf.mxu1 }
 0x19f   :  { %2356 = vmatpush3.msra.mxu0 %v561_v47  ;;  %2367 = vmatprep.mubr.msk.f32.mxu0 %vm2600_vm0, %v2599_v0 }
 0x1a0   :  { %2357 = vmatprep.subr.mxu0 %v2599_v0  ;;  %v2354_v55 = vpop.f32.mrf.mxu1 }
 0x1a1   :  { %2358 = vmatpush3.msra.mxu0 %v560_v49 }
 0x1a2   :  { %2359 = vmatprep.subr.mxu0 %v2599_v0 }
 0x1a3   :  { %2360 = vmatpush3.msra.mxu0 %v559_v50 }
 0x1a4   :  { %2361 = vmatprep.subr.mxu0 %v2599_v0 }
 0x1a5   :  { %2362 = vmatpush3.msra.mxu0 %v558_v51 }
 0x1a6   :  { %2363 = vmatprep.subr.mxu0 %v2599_v0 }
 0x1a7   :  { %2364 = vmatpush3.msra.mxu0 %v557_v52 }
 0x1a8   :  { %2365 = vmatprep.subr.mxu0 %v2599_v0 }
 0x1a9   :  { %2366 = vmatpush3.msra.mxu0 %v556_v53 }
 0x1ae   :  { %v807_v57 = vpop.f32.mrf.mxu1 }
 0x1af   :  { %v808_v58 = vadd.f32 %v2162_v56, %v807_v57 }
 0x1b0   :  { %v2388_v59 = vpop.f32.mrf.mxu1 }
 0x1b1   :  { %2389 = vmatprep.subr.msk.mxu0 %vm822_vm6, %v808_v58 }
 0x25e   :  { %v552_v61 = vpop.f32.mrf.mxu0 }
 0x25f   :  { %v553_v62 = vadd.f32 %v2157_v60, %v552_v61  ;;  %v2194_v61 = vld [vmem:[%s2137_s3] ss:$0 sm:$0xff]  ;;  %s2151_s3 = sld [smem:[%s2932_s0 + %s2638_s30]]  }
 0x260   :  { %v2347_v63 = vpop.f32.mrf.mxu0 }
 0x261   :  { %2368 = vmatmul.mubr.msk.f32.vlgmr.msra.gmra.mxu0 %vm639_vm7, %v553_v62 }
 0x262   :  { %2390 = vmatpush3.msk.msra.mxu0 %vm822_vm6, %v808_v58  ;;  %2391 = vmatprep.mubr.msk.f32.mxu0 %vm815_vm8, %v813_v1 }
 0x265   :  { %2392 = vmatmul.mubr.msk.f32.vlgmr.msra.gmra.mxu0 %vm815_vm8, %v814_v2 }
 0x266   :  { %2396 = vmatprep.mubr.msk.f32.mxu0 %vm901_vm9, %v811_v3 }
 0x321   :  { %v709_v5 = vpop.f32.mrf.mxu0 }
 0x322   :  { %v710_v7 = vadd.f32 %v709_v5, %v635_v54  ;;  %v1320_v54 = vld [vmem:[%s2134_s29] sm:$0x1]  ;;  %s2150_s29 = sld [smem:[%s2932_s0 + %s2637_s26]]  }
 0x323   :  { %v2369_v8 = vpop.f32.mrf.mxu0 }
 0x324   :  { %v720_v9 = vadd.f32 %v2161_v6, %v710_v7 }
 0x325   :  { %v2393_v14 = vpop.f32.mrf.mxu0 }
 0x326   :  { %2394 = vmatprep.subr.msk.mxu0 %vm908_vm10, %v720_v9 }
 0x327   :  { %2395 = vmatpush3.msk.msra.mxu0 %vm908_vm10, %v720_v9  ;;  %v892_v15 = vpop.f32.mrf.mxu0  ;;  %v1419_v9 = vlaneseq }
 0x328   :  { %2397 = vmatmul.mubr.msk.f32.vlgmr.msra.gmra.mxu0 %vm901_vm9, %v812_v10 }
 0x329   :  { %2414 = vmatprep.mubr.msk.f32.mxu0 %vm1082_vm12, %v1080_v20  ;;  %v1420_v10 = vshrl.u32 %v1419_v9, 7 }
 0x32b   :  { %v1421_v11 = vsub.s32 0, %v1420_v10 }
 0x3e8   :  { %v2398_v16 = vpop.f32.mrf.mxu0 }
 0x3e9   :  { %v984_v19 = vadd.f32 %v2398_v16, %v2393_v14 }
 0x3ea   :  { %v978_v17 = vpop.f32.mrf.mxu0 }
 0x3eb   :  { %v979_v18 = vadd.f32 %v978_v17, %v892_v15 }
 0x3ed   :  { %2407 = vmatprep.mubr.msk.f32.mxu1 %vm998_vm11, %v979_v18 }
 0x3ee   :  { %2408 = vmatmul.mubr.msk.f32.vlgmr.msra.gmra.mxu1 %vm998_vm11, %v984_v19 }
 0x3ef   :  { %2449 = vmatprep.mubr.msk.f32.mxu1 %vm2600_vm0, %v2599_v0 }
 0x4ae   :  { %v2409_v22 = vpop.f32.mrf.mxu1 }
 0x4af   :  { %v1077_v23 = vadd.f32 %v2409_v22, %v2170_v21 }
 0x4b0   :  { %v1071_v24 = vpop.f32.mrf.mxu1 }
 0x4b1   :  { %v1072_v25 = vadd.f32 %v2170_v21, %v1071_v24  ;;  %2410 = vmatprep.subr.msk.mxu0 %vm1089_vm13, %v1077_v23  ;;  %v1626_v24 = vld [vmem:[%s2138_s11 + $0x10] sm:$0xff] }
 0x4b2   :  { %2411 = vmatpush3.msk.msra.mxu0 %vm1089_vm13, %v1077_v23  ;;  %v1627_v23 = vld [vmem:[%s2138_s11 + $0x18] sm:$0xff] }
 0x4b3   :  { %2412 = vmatprep.subr.mxu0 %v1072_v25 }
 0x4b4   :  { %2413 = vmatpush3.msra.mxu0 %v1072_v25  ;;  %v1625_v25 = vld [vmem:[%s2138_s11 + $0x8] sm:$0xff] }
 0x4b5   :  { %2415 = vmatmul.mubr.msk.f32.vlgmr.msra.gmra.mxu0 %vm1082_vm12, %v1081_v26  ;;  %v1624_v26 = vld [vmem:[%s2138_s11] sm:$0xff] }
 0x4b6   :  { %2421 = vmatprep.mubr.msk.f32.mxu0 %vm1186_vm15, %v1178_v28 }
 0x575   :  { %v2416_v29 = vpop.f32.mrf.mxu0 }
 0x576   :  { %v1169_v30 = vmax.f32 %v2416_v29, 0.0 }
 0x577   :  { %v1159_v31 = vpop.f32.mrf.mxu0 }
 0x578   :  { %1172 = vst.msk [vmem:[#allocation2 + $0x8] sm:$0xf] %vm1171_vm1, %v1169_v30  ;;  %v1168_v32 = vmax.f32 %v1159_v31, 0.0 }
 0x57a   :  { %1170 = vst.msk [vmem:[#allocation2] sm:$0xff] %vm998_vm11, %v1168_v32  ;;  %v2204_v32 = vld [vmem:[%s2139_s15] ss:$0 sm:$0xff] }
 0x57f   :  { %v1177_v33 = vld [vmem:[#allocation2 + $0x8] sm:$0x1f] }
 0x580   :  { %2417 = vmatprep.subr.msk.mxu0 %vm1211_vm2, %v1177_v33 }
 0x581   :  { %2418 = vmatpush3.msk.msra.mxu0 %vm1211_vm2, %v1177_v33  ;;  %v1176_v34 = vld [vmem:[#allocation2] sm:$0xff] }
 0x582   :  { %2419 = vmatprep.subr.mxu0 %v1176_v34 }
 0x583   :  { %2420 = vmatpush3.msra.mxu0 %v1176_v34  ;;  %v2206_v34 = vld [vmem:[%s2769_s17] ss:$0 sm:$0xff]  ;;  %s2628_s17 = smov 26  }
 0x584   :  { %2422 = vmatmul.mubr.msk.f32.vlgmr.msra.gmra.mxu0 %vm1186_vm15, %v1179_v35  ;;  %2452 = vmatprep.subr.mxu0 %v1436_v36  ;;  %s2140_s23 = sld [smem:[%s2932_s0 + %s2628_s17]]  }
 0x585   :  { %2424 = vmatprep.mubr.msk.f32.mxu0 %vm1186_vm15, %v1180_v37  ;;  %2453 = vmatpush3.msra.mxu0 %v1436_v36 }
 0x586   :  { %2454 = vmatprep.subr.mxu0 %v1435_v38 }
 0x587   :  { %2455 = vmatpush3.msra.mxu0 %v1435_v38 }
 0x588   :  { %2425 = vmatmul.mubr.msk.f32.gmra.mxu0 %vm1186_vm15, %v1181_v39  ;;  %2456 = vmatprep.subr.mxu0 %v1434_v44 }
 0x589   :  { %2427 = vmatprep.mubr.msk.f32.mxu0 %vm1186_vm15, %v1182_v40  ;;  %2457 = vmatpush3.msra.mxu0 %v1434_v44  ;;  %v1749_v44 = vld [vmem:[%s2142_s20 + $0x18] sm:$0xff] }
 0x58a   :  { %2458 = vmatprep.subr.mxu0 %v1433_v45 }
 0x58b   :  { %2459 = vmatpush3.msra.mxu0 %v1433_v45  ;;  %v1748_v45 = vld [vmem:[%s2142_s20 + $0x10] sm:$0xff] }
 0x58c   :  { %2428 = vmatmul.mubr.msk.f32.gmra.mxu0 %vm1186_vm15, %v1183_v41  ;;  %2472 = vmatprep.subr.mxu0 %v2599_v0 }
 0x58d   :  { %2430 = vmatprep.mubr.msk.f32.mxu0 %vm1186_vm15, %v1184_v42 }
 0x590   :  { %2431 = vmatmul.mubr.msk.f32.gmra.mxu0 %vm1186_vm15, %v1185_v43 }
 0x644   :  { %v2423_v46 = vpop.f32.mrf.mxu0 }
 0x646   :  { %v1281_v47 = vpop.f32.mrf.mxu0 }
 0x647   :  { %2460 = vmatprep.mubr.msk.f32.mxu0 %vm998_vm11, %v1281_v47 }
 0x648   :  { %v2426_v48 = vpop.f32.mrf.mxu0  ;;  %2461 = vmatmul.mubr.msk.f32.vlgmr.msra.gmra.mxu0 %vm998_vm11, %v2423_v46 }
 0x64a   :  { %v1291_v49 = vpop.f32.mrf.mxu0 }
 0x64b   :  { %2463 = vmatprep.mubr.msk.f32.mxu0 %vm998_vm11, %v1291_v49 }
 0x64c   :  { %v2429_v50 = vpop.f32.mrf.mxu0  ;;  %2464 = vmatmul.mubr.msk.f32.gmra.mxu0 %vm998_vm11, %v2426_v48 }
 0x64e   :  { %v1301_v51 = vpop.f32.mrf.mxu0 }
 0x64f   :  { %2466 = vmatprep.mubr.msk.f32.mxu0 %vm998_vm11, %v1301_v51 }
 0x650   :  { %v2432_v52 = vpop.f32.mrf.mxu0  ;;  %2467 = vmatmul.mubr.msk.f32.gmra.mxu0 %vm998_vm11, %v2429_v50 }
 0x651   :  { %2434 = vmatpush3.xpose.msk.msra.mxu1 %vm998_vm11, %v2432_v52 }
 0x652   :  { %v1311_v53 = vpop.f32.mrf.mxu0  ;;  %2435 = vmatprep.subr.mxu1 %v2599_v0 }
 0x653   :  { %2469 = vmatprep.mubr.msk.f32.mxu0 %vm998_vm11, %v1311_v53 }
 0x654   :  { %2470 = vmatmul.mubr.msk.f32.gmra.mxu0 %vm998_vm11, %v2432_v52  ;;  %v2207_v52 = vld [vmem:[%s2140_s23] ss:$0 sm:$0xff] }
 0x655   :  { %2436 = vmatpush3.xpose.msk.msra.mxu1 %vm998_vm11, %v1311_v53  ;;  %2488 = vmatprep.mubr.msk.f32.mxu0 %vm2600_vm0, %v2599_v0 }
 0x656   :  { %2437 = vmatprep.subr.mxu1 %v2599_v0 }
 0x659   :  { %2438 = vmatpush3.xpose.msk.msra.mxu1 %vm998_vm11, %v2429_v50 }
 0x65a   :  { %2439 = vmatprep.subr.mxu1 %v2599_v0 }
 0x65d   :  { %2440 = vmatpush3.xpose.msk.msra.mxu1 %vm998_vm11, %v1301_v51 }
 0x65e   :  { %2441 = vmatprep.subr.mxu1 %v2599_v0 }
 0x661   :  { %2442 = vmatpush3.xpose.msk.msra.mxu1 %vm998_vm11, %v2426_v48 }
 0x662   :  { %2443 = vmatprep.subr.mxu1 %v2599_v0 }
 0x665   :  { %2444 = vmatpush3.xpose.msk.msra.mxu1 %vm998_vm11, %v1291_v49 }
 0x666   :  { %2445 = vmatprep.subr.mxu1 %v2599_v0 }
 0x669   :  { %2446 = vmatpush3.xpose.msk.msra.mxu1 %vm998_vm11, %v2423_v46  ;;  %v1747_v46 = vld [vmem:[%s2142_s20 + $0x8] sm:$0xff] }
 0x66a   :  { %2447 = vmatprep.subr.mxu1 %v2599_v0 }
 0x66d   :  { %2448 = vmatpush3.xpose.msk.msra.mxu1 %vm998_vm11, %v1281_v47  ;;  %v1746_v47 = vld [vmem:[%s2142_s20] sm:$0xff] }
 0x66e   :  { %2491 = vmatprep.subr.mxu1 %v2599_v0 }
 0x670   :  { %2450 = vmatmul.mubr.msk.f32.vlgmr.msra.gmra.mxu1 %vm998_vm11, %v1320_v54  ;;  %v2208_v54 = vld [vmem:[%s2141_s27] ss:$0 sm:$0xff] }
 0x671   :  { %2499 = vmatprep.mubr.msk.f32.mxu1 %vm2600_vm0, %v2599_v0  ;;  %2492 = vmatpush3.msra.mxu1 %v1627_v23 }
 0x672   :  { %2493 = vmatprep.subr.mxu1 %v2599_v0 }
 0x673   :  { %2494 = vmatpush3.msra.mxu1 %v1626_v24 }
 0x674   :  { %2495 = vmatprep.subr.mxu1 %v2599_v0 }
 0x675   :  { %2496 = vmatpush3.msra.mxu1 %v1625_v25 }
 0x676   :  { %2497 = vmatprep.subr.mxu1 %v2599_v0 }
 0x677   :  { %2498 = vmatpush3.msra.mxu1 %v1624_v26  ;;  %v1960_v26 = vld [vmem:[%s2148_s13 + $0x18] sm:$0xff] }
 0x678   :  { %2513 = vmatprep.subr.mxu1 %v2599_v0 }
 0x708   :  { %v2462_v55 = vpop.f32.mrf.mxu0 }
 0x709   :  { %v1516_v7 = vadd.f32 %v2462_v55, %v2194_v61 }
 0x70a   :  { %v1510_v56 = vpop.f32.mrf.mxu0 }
 0x70b   :  { %v1511_v8 = vadd.f32 %v2194_v61, %v1510_v56 }
 0x70c   :  { %v2465_v57 = vpop.f32.mrf.mxu0 }
 0x70d   :  { %v1526_v5 = vadd.f32 %v2465_v57, %v2194_v61  ;;  %v1846_v57 = vld [vmem:[%s2144_s1 + $0x38] sm:$0xff] }
 0x70e   :  { %v1520_v58 = vpop.f32.mrf.mxu0 }
 0x70f   :  { %v1521_v6 = vadd.f32 %v2194_v61, %v1520_v58  ;;  %v1845_v58 = vld [vmem:[%s2144_s1 + $0x30] sm:$0xff] }
 0x710   :  { %v2468_v59 = vpop.f32.mrf.mxu0 }
 0x711   :  { %v1536_v3 = vadd.f32 %v2468_v59, %v2194_v61  ;;  %v1844_v59 = vld [vmem:[%s2144_s1 + $0x28] sm:$0xff] }
 0x712   :  { %v1530_v60 = vpop.f32.mrf.mxu0 }
 0x713   :  { %v1531_v4 = vadd.f32 %v2194_v61, %v1530_v60  ;;  %v1843_v60 = vld [vmem:[%s2144_s1 + $0x20] sm:$0xff] }
 0x714   :  { %v2471_v62 = vpop.f32.mrf.mxu0 }
 0x715   :  { %v1546_v63 = vadd.f32 %v2471_v62, %v2194_v61  ;;  %v1841_v62 = vld [vmem:[%s2144_s1 + $0x10] sm:$0xff] }
 0x716   :  { %v1540_v1 = vpop.f32.mrf.mxu0 }
 0x717   :  { %v1541_v2 = vadd.f32 %v2194_v61, %v1540_v1  ;;  %2473 = vmatpush3.msra.mxu0 %v1546_v63  ;;  %v1842_v61 = vld [vmem:[%s2144_s1 + $0x18] sm:$0xff]  ;;  %v1840_v63 = vld [vmem:[%s2144_s1 + $0x8] sm:$0xff]  ;;  %v1839_v1 = vld [vmem:[%s2144_s1] sm:$0xff] }
 0x718   :  { %2474 = vmatprep.subr.mxu0 %v2599_v0 }
 0x719   :  { %2475 = vmatpush3.msra.mxu0 %v1541_v2  ;;  %v2209_v2 = vld [vmem:[%s2143_s5] ss:$0 sm:$0xff] }
 0x71a   :  { %2476 = vmatprep.subr.mxu0 %v2599_v0 }
 0x71b   :  { %2477 = vmatpush3.msra.mxu0 %v1536_v3 }
 0x71c   :  { %2478 = vmatprep.subr.mxu0 %v2599_v0 }
 0x71d   :  { %2479 = vmatpush3.msra.mxu0 %v1531_v4 }
 0x71e   :  { %2480 = vmatprep.subr.mxu0 %v2599_v0 }
 0x71f   :  { %2481 = vmatpush3.msra.mxu0 %v1526_v5 }
 0x720   :  { %2482 = vmatprep.subr.mxu0 %v2599_v0 }
 0x721   :  { %2483 = vmatpush3.msra.mxu0 %v1521_v6 }
 0x722   :  { %2484 = vmatprep.subr.mxu0 %v2599_v0 }
 0x723   :  { %2485 = vmatpush3.msra.mxu0 %v1516_v7 }
 0x724   :  { %2486 = vmatprep.subr.mxu0 %v2599_v0 }
 0x725   :  { %2487 = vmatpush3.msra.mxu0 %v1511_v8 }
 0x726   :  { %2502 = vmatprep.subr.mxu0 %v2599_v0 }
 0x730   :  { %v1414_v12 = vpop.f32.mrf.mxu1 }
 0x731   :  { %v1422_v14 = vrot.slane %v1414_v12, %v1421_v11 }
 0x732   :  { %v2451_v15 = vpop.f32.mrf.mxu1 }
 0x733   :  { %v1423_v16 = vadd.f32 %v1422_v14, %v1418_v13  ;;  %v2211_v15 = vld [vmem:[%s2145_s9] ss:$0 sm:$0xff] }
 0x735   :  { %v1424_v17 = vsel %vm737_vm4, %v1423_v16, -inf }
 0x736   :  { %1425 = vmax.xlane.f32.xlu0 %v1424_v17 }
 0x7bf   :  { %v1426_v18 = vpop.xlane.xlu0 %1425 }
 0x7c0   :  { %v1427_v19 = vsub.f32 %v1423_v16, %v1426_v18 }
 0x7c2   :  { %v1428_v20 = vmul.f32 1.442695, %v1427_v19 }
 0x7c4   :  { %2589 = vpow2.f32 %v1428_v20 }
 0x7d1   :  { %v2590_v21 = vpop.eup %2589 }
 0x7d2   :  { %2489 = vmatmul.mubr.msk.f32.vlgmr.msra.gmra.mxu0 %vm737_vm4, %v2590_v21  ;;  %v1430_v22 = vsel %vm737_vm4, %v2590_v21, 0.0 }
 0x7d3   :  { %1431 = vadd.xlane.f32.xlu1 %v1430_v22  ;;  %2510 = vmatprep.mubr.msk.f32.mxu0 %vm2600_vm0, %v2599_v0 }
 0x7d4   :  { %2503 = vmatpush3.msra.mxu0 %v1749_v44 }
 0x7d5   :  { %2504 = vmatprep.subr.mxu0 %v2599_v0 }
 0x7d6   :  { %2505 = vmatpush3.msra.mxu0 %v1748_v45 }
 0x7d7   :  { %2506 = vmatprep.subr.mxu0 %v2599_v0 }
 0x7d8   :  { %2507 = vmatpush3.msra.mxu0 %v1747_v46 }
 0x7d9   :  { %2508 = vmatprep.subr.mxu0 %v2599_v0 }
 0x7da   :  { %2509 = vmatpush3.msra.mxu0 %v1746_v47 }
 0x7db   :  { %2532 = vmatprep.subr.mxu0 %v2599_v0 }
 0x85c   :  { %v1432_v27 = vpop.xlane.xlu1 %1431 }
 0x85d   :  { %2591 = vrcp.f32 %v1432_v27  ;;  %v1959_v27 = vld [vmem:[%s2148_s13 + $0x10] sm:$0xff] }
 0x86a   :  { %v2592_v28 = vpop.eup %2591 }
 0x892   :  { %v1618_v29 = vpop.f32.mrf.mxu0 }
 0x893   :  { %v1623_v30 = vmul.f32 %v2592_v28, %v1618_v29  ;;  %v1958_v28 = vld [vmem:[%s2148_s13 + $0x8] sm:$0xff]  ;;  %v1957_v29 = vld [vmem:[%s2148_s13] sm:$0xff] }
 0x894   :  { %v2490_v31 = vpop.f32.mrf.mxu0 }
 0x895   :  { %2500 = vmatmul.mubr.msk.f32.vlgmr.msra.gmra.mxu1 %vm998_vm11, %v1623_v30 }
 0x896   :  { %2529 = vmatprep.mubr.msk.f32.mxu1 %vm2600_vm0, %v2599_v0  ;;  %2514 = vmatpush3.msra.mxu1 %v1846_v57 }
 0x897   :  { %2515 = vmatprep.subr.mxu1 %v2599_v0 }
 0x898   :  { %2516 = vmatpush3.msra.mxu1 %v1845_v58 }
 0x899   :  { %2517 = vmatprep.subr.mxu1 %v2599_v0 }
 0x89a   :  { %2518 = vmatpush3.msra.mxu1 %v1844_v59 }
 0x89b   :  { %2519 = vmatprep.subr.mxu1 %v2599_v0 }
 0x89c   :  { %2520 = vmatpush3.msra.mxu1 %v1843_v60 }
 0x89d   :  { %2521 = vmatprep.subr.mxu1 %v2599_v0 }
 0x89e   :  { %2522 = vmatpush3.msra.mxu1 %v1842_v61 }
 0x89f   :  { %2523 = vmatprep.subr.mxu1 %v2599_v0 }
 0x8a0   :  { %2524 = vmatpush3.msra.mxu1 %v1841_v62 }
 0x8a1   :  { %2525 = vmatprep.subr.mxu1 %v2599_v0 }
 0x8a2   :  { %2526 = vmatpush3.msra.mxu1 %v1840_v63 }
 0x8a3   :  { %2527 = vmatprep.subr.mxu1 %v2599_v0 }
 0x8a4   :  { %2528 = vmatpush3.msra.mxu1 %v1839_v1 }
 0x955   :  { %v1704_v33 = vpop.f32.mrf.mxu1 }
 0x956   :  { %v1705_v35 = vadd.f32 %v2204_v32, %v1704_v33 }
 0x957   :  { %v2501_v36 = vpop.f32.mrf.mxu1 }
 0x958   :  { %v1715_v37 = vadd.f32 %v2206_v34, %v1705_v35  ;;  %v2213_v34 = vld [vmem:[%s2146_s18] ss:$0 sm:$0xff] }
 0x959   :  { %v2214_v36 = vld [vmem:[%s2147_s21] ss:$0 sm:$0xff] }
 0x95a   :  { %v1716_v38 = vsel %vm998_vm11, %v1715_v37, 0.0 }
 0x95b   :  { %1717 = vadd.xlane.f32.xlu1 %v1716_v38 }
 0x9e4   :  { %v1718_v39 = vpop.xlane.xlu1 %1717 }
 0x9e5   :  { %v1720_v40 = vmul.f32 0.03125, %v1718_v39  ;;  %v2035_v39 = vld [vmem:[%s2149_s25] sm:$0xff] }
 0x9e7   :  { %v1721_v41 = vsub.f32 %v1715_v37, %v1720_v40 }
 0x9e9   :  { %v1722_v42 = vmul.f32 %v1721_v41, %v1721_v41 }
 0x9eb   :  { %v1723_v43 = vsel %vm998_vm11, %v1722_v42, 0.0  ;;  %v2034_v42 = vld [vmem:[%s2150_s29] sm:$0x3] }
 0x9ec   :  { %1724 = vadd.xlane.f32.xlu1 %v1723_v43 }
 0xa75   :  { %v1725_v48 = vpop.xlane.xlu1 %1724 }
 0xa76   :  { %v1726_v49 = vmul.f32 0.03125, %v1725_v48 }
 0xa78   :  { %v1727_v50 = vadd.f32 1e-05, %v1726_v49 }
 0xa7a   :  { %2593 = vrsqrt.f32 %v1727_v50 }
 0xa87   :  { %v2594_v51 = vpop.eup %2593 }
 0xa88   :  { %v1729_v53 = vmul.f32 %v2594_v51, %v1721_v41 }
 0xa8a   :  { %v1737_v55 = vmul.f32 %v2207_v52, %v1729_v53 }
 0xa8c   :  { %v1745_v56 = vadd.f32 %v2208_v54, %v1737_v55 }
 0xa8e   :  { %2511 = vmatmul.mubr.msk.f32.vlgmr.msra.gmra.mxu0 %vm998_vm11, %v1745_v56 }
 0xa8f   :  { %2540 = vmatprep.mubr.msk.f32.mxu0 %vm2600_vm0, %v2599_v0  ;;  %2533 = vmatpush3.msra.mxu0 %v1960_v26 }
 0xa90   :  { %2534 = vmatprep.subr.mxu0 %v2599_v0 }
 0xa91   :  { %2535 = vmatpush3.msra.mxu0 %v1959_v27 }
 0xa92   :  { %2536 = vmatprep.subr.mxu0 %v2599_v0 }
 0xa93   :  { %2537 = vmatpush3.msra.mxu0 %v1958_v28 }
 0xa94   :  { %2538 = vmatprep.subr.mxu0 %v2599_v0 }
 0xa95   :  { %2539 = vmatpush3.msra.mxu0 %v1957_v29 }
 0xa96   :  { %2543 = vmatprep.subr.mxu0 %v2599_v0 }
 0xb4e   :  { %v1826_v3 = vpop.f32.mrf.mxu0 }
 0xb4f   :  { %v1827_v4 = vadd.f32 %v2209_v2, %v1826_v3 }
 0xb50   :  { %v2512_v5 = vpop.f32.mrf.mxu0 }
 0xb51   :  { %v1830_v6 = vmul.f32 %v1827_v4, %v1827_v4 }
 0xb53   :  { %v1831_v7 = vmul.f32 %v1830_v6, %v1827_v4 }
 0xb55   :  { %v1832_v8 = vmul.f32 0.044715, %v1831_v7 }
 0xb57   :  { %v1833_v9 = vadd.f32 %v1832_v8, %v1827_v4 }
 0xb59   :  { %v1834_v10 = vmul.f32 0.7978846, %v1833_v9 }
 0xb5b   :  { %2595 = vtanh.f32 %v1834_v10 }
 0xb68   :  { %v2596_v11 = vpop.eup %2595 }
 0xb69   :  { %v1836_v12 = vadd.f32 1.0, %v2596_v11 }
 0xb6b   :  { %v1837_v13 = vmul.f32 0.5, %v1836_v12 }
 0xb6d   :  { %v1838_v14 = vmul.f32 %v1837_v13, %v1827_v4 }
 0xb6f   :  { %2530 = vmatmul.mubr.msk.f32.vlgmr.msra.gmra.mxu1 %vm737_vm4, %v1838_v14 }
 0xc2f   :  { %v1923_v16 = vpop.f32.mrf.mxu1 }
 0xc30   :  { %v1924_v17 = vadd.f32 %v2211_v15, %v1923_v16 }
 0xc31   :  { %v2531_v18 = vpop.f32.mrf.mxu1 }
 0xc32   :  { %v1927_v19 = vadd.f32 %v1924_v17, %v1745_v56 }
 0xc34   :  { %v1928_v20 = vsel %vm998_vm11, %v1927_v19, 0.0 }
 0xc35   :  { %1929 = vadd.xlane.f32.xlu1 %v1928_v20 }
 0xcbe   :  { %v1930_v21 = vpop.xlane.xlu1 %1929 }
 0xcbf   :  { %v1931_v22 = vmul.f32 0.03125, %v1930_v21 }
 0xcc1   :  { %v1932_v23 = vsub.f32 %v1927_v19, %v1931_v22 }
 0xcc3   :  { %v1933_v24 = vmul.f32 %v1932_v23, %v1932_v23 }
 0xcc5   :  { %v1934_v25 = vsel %vm998_vm11, %v1933_v24, 0.0 }
 0xcc6   :  { %1935 = vadd.xlane.f32.xlu1 %v1934_v25 }
 0xd4f   :  { %v1936_v30 = vpop.xlane.xlu1 %1935 }
 0xd50   :  { %v1937_v31 = vmul.f32 0.03125, %v1936_v30 }
 0xd52   :  { %v1938_v32 = vadd.f32 1e-05, %v1937_v31 }
 0xd54   :  { %2597 = vrsqrt.f32 %v1938_v32 }
 0xd61   :  { %v2598_v33 = vpop.eup %2597 }
 0xd62   :  { %v1940_v35 = vmul.f32 %v2598_v33, %v1932_v23 }
 0xd64   :  { %v1948_v37 = vmul.f32 %v2213_v34, %v1940_v35 }
 0xd66   :  { %v1956_v38 = vadd.f32 %v2214_v36, %v1948_v37 }
 0xd68   :  { %2541 = vmatmul.mubr.msk.f32.vlgmr.msra.gmra.mxu0 %vm998_vm11, %v1956_v38 }
 0xd69   :  { %2545 = vmatprep.mubr.msk.f32.mxu0 %vm2600_vm0, %v2599_v0 }
 0xe28   :  { %v2030_v40 = vpop.f32.mrf.mxu0 }
 0xe29   :  { %v2036_v41 = vmul.f32 %v2035_v39, %v2030_v40 }
 0xe2a   :  { %v2542_v43 = vpop.f32.mrf.mxu0 }
 0xe2b   :  { %2544 = vmatpush3.msra.mxu0 %v2036_v41 }
 0xe2c   :  { %2546 = vmatmul.mubr.msk.f32.vlgmr.msra.gmra.mxu0 %vm482_vm5, %v2034_v42 }
 0xeec   :  { %v2106_v0 = vpop.f32.mrf.mxu0 }
 0xeed   :  { %2110 = vst [vmem:[%s2151_s3] sm:$0x3] %v2106_v0 }
 0xeee   :  { %v2547_v44 = vpop.f32.mrf.mxu0 }

</bundles_post_ra>
